<compile_context>
chip_gen: v7x
topology: tpu7x:2x2x1
jax: 0.10.0
libtpu: 0.0.40
codegen_flags: <defaults>
</compile_context>

<pallas_src>
import jax
import jax.numpy as jnp
from jax import lax
from jax.experimental import pallas as pl
from jax.experimental.pallas import tpu as pltpu

# (in_features, out_features) of every nn.Linear, in forward order.
ENC_DIMS = [(640, 128), (128, 128), (128, 128), (128, 64), (64, 32), (32, 32)]
DEC_DIMS = [(32, 32), (32, 64), (64, 128), (128, 128), (128, 128), (128, 128), (128, 640)]
ALL_DIMS = ENC_DIMS + DEC_DIMS
N_LINEAR = len(ALL_DIMS)          # 13
N_BN = 11                         # Linears 0..4 and 6..11 feed a BatchNorm1d
EPS = 1e-5
LANE = 128
SUBLANE = 8
ROW_TILE = 256                    # row tile for the gridded path (good for v6e/v7x MXU)
FUSED_MAX_ROWS = 512              # above this, switch to the gridded two-pass-BN path
PADDED_MACS = 640 * 128 + 11 * 128 * 128 + 128 * 640   # padded MACs per row


def _round_up(v, m):
    return ((v + m - 1) // m) * m


# -----------------------------------------------------------------------------
# Fused whole-batch kernel (small / latency-bound batches)
# -----------------------------------------------------------------------------
def _build_fused_kernel(n_real, n_pad):
    inv_n = 1.0 / float(n_real)

    def kernel(x_ref, w0_ref, wmid_ref, w12_ref, gam_ref, bet_ref,
               bc_ref, bd_ref, codes_ref, dec_ref):
        # Row-validity mask, built once from an iota (no DMA, no per-layer broadcast).
        rows = lax.broadcasted_iota(jnp.int32, (n_pad, LANE), 0)
        maskb = rows < n_real
        gam = gam_ref[...]                       # (16, 128), rows 0..N_BN-1 valid
        bet = bet_ref[...]

        def bn_relu(h, bi):
            # Training-mode BatchNorm1d over the real rows (padded rows are zero, so the
            # unmasked sums already equal the real-row sums).  Affine folded to one
            # per-feature scale/shift.
            mean = jnp.sum(h, axis=0, keepdims=True) * inv_n
            var = jnp.maximum(jnp.sum(h * h, axis=0, keepdims=True) * inv_n
                              - mean * mean, 0.0)
            scale = gam[bi:bi + 1, :] * lax.rsqrt(var + EPS)
            shift = bet[bi:bi + 1, :] - mean * scale
            return jnp.where(maskb, jnp.maximum(h * scale + shift, 0.0), 0.0)

        # ---- encoder: 5 x (Linear[bias folded into BN] -> BN -> ReLU) ----
        h = jnp.dot(x_ref[...], w0_ref[...], preferred_element_type=jnp.float32)
        h = bn_relu(h, 0)
        bi = 1
        for j in range(4):                       # Linears 1..4
            h = jnp.dot(h, wmid_ref[j], preferred_element_type=jnp.float32)
            h = bn_relu(h, bi)
            bi += 1
        # Final encoder Linear (64->32, padded to 128 lanes) keeps its bias.
        codes = jnp.dot(h, wmid_ref[4], preferred_element_type=jnp.float32) + bc_ref[...]
        codes_ref[...] = codes

        # ---- decoder: 6 x (Linear -> BN -> ReLU), then Linear(128 -> 640) + bias ----
        h = jnp.where(maskb, codes, 0.0)         # padded rows carry the bias -> re-zero
        for j in range(5, 11):                   # Linears 6..11
            h = jnp.dot(h, wmid_ref[j], preferred_element_type=jnp.float32)
            h = bn_relu(h, bi)
            bi += 1
        dec_ref[...] = jnp.dot(h, w12_ref[...],
                               preferred_element_type=jnp.float32) + bd_ref[...]

    return kernel


def _fused_forward(x_pad, packed, n_real):
    n_pad = x_pad.shape[0]
    vmem = pl.BlockSpec(memory_space=pltpu.MemorySpace.VMEM)
    flops = 2 * n_pad * PADDED_MACS
    bytes_accessed = 4 * (n_pad * (640 + LANE + 640) + PADDED_MACS + 34 * LANE + 640)
    return pl.pallas_call(
        _build_fused_kernel(n_real, n_pad),
        out_shape=(jax.ShapeDtypeStruct((n_pad, LANE), jnp.float32),   # codes (lane-dense)
                   jax.ShapeDtypeStruct((n_pad, 640), jnp.float32)),   # decoded
        in_specs=[vmem] * 8,
        out_specs=(vmem, vmem),
        compiler_params=pltpu.CompilerParams(vmem_limit_bytes=32 * 1024 * 1024),
        cost_estimate=pl.CostEstimate(flops=flops, transcendentals=N_BN * LANE,
                                      bytes_accessed=bytes_accessed),
    )(x_pad, packed["w0"], packed["wmid"], packed["w12"],
      packed["gam"], packed["bet"], packed["bc"], packed["bd"])


# -----------------------------------------------------------------------------
# Gridded two-pass-BN path (large batches): one pallas_call per Linear stage.
# -----------------------------------------------------------------------------
def _build_stage_kernel(has_affine, apply_relu, apply_mask, has_bias, want_stats,
                        n_real, tile_rows):
    def kernel(*refs):
        i = 0
        a_ref = refs[i]; i += 1
        w_ref = refs[i]; i += 1
        ss_ref = None
        b_ref = None
        if has_affine:
            ss_ref = refs[i]; i += 1
        if has_bias:
            b_ref = refs[i]; i += 1
        out_ref = refs[i]; i += 1

        h = a_ref[...]
        if has_affine:                            # previous layer's folded BN affine
            h = h * ss_ref[0:1, :] + ss_ref[1:2, :]
        if apply_relu:
            h = jnp.maximum(h, 0.0)
        if apply_mask:                            # zero padded rows (keeps stats exact)
            t = pl.program_id(0)
            rows = lax.broadcasted_iota(jnp.int32, h.shape, 0) + t * tile_rows
            h = jnp.where(rows < n_real, h, 0.0)
        y = jnp.dot(h, w_ref[...], preferred_element_type=jnp.float32)
        if has_bias:
            y = y + b_ref[...]
        out_ref[...] = y
        if want_stats:                            # per-tile partial BN statistics
            sum_ref = refs[i]
            sq_ref = refs[i + 1]
            sum_ref[...] = jnp.sum(y, axis=0, keepdims=True)[None]
            sq_ref[...] = jnp.sum(y * y, axis=0, keepdims=True)[None]

    return kernel


def _stage_call(a, w, affine, bias, *, apply_relu, apply_mask, want_stats,
                n_real, tile_rows):
    n_pad, in_w = a.shape
    out_w = w.shape[1]
    num_tiles = n_pad // tile_rows

    in_specs = [pl.BlockSpec((tile_rows, in_w), lambda t: (t, 0)),
                pl.BlockSpec((in_w, out_w), lambda t: (0, 0))]
    operands = [a, w]
    if affine is not None:
        in_specs.append(pl.BlockSpec((2, in_w), lambda t: (0, 0)))
        operands.append(affine)
    if bias is not None:
        in_specs.append(pl.BlockSpec((1, out_w), lambda t: (0, 0)))
        operands.append(bias)

    out_shape = [jax.ShapeDtypeStruct((n_pad, out_w), jnp.float32)]
    out_specs = [pl.BlockSpec((tile_rows, out_w), lambda t: (t, 0))]
    if want_stats:
        out_shape += [jax.ShapeDtypeStruct((num_tiles, 1, out_w), jnp.float32)] * 2
        out_specs += [pl.BlockSpec((1, 1, out_w), lambda t: (t, 0, 0))] * 2

    kernel = _build_stage_kernel(affine is not None, apply_relu, apply_mask,
                                 bias is not None, want_stats, n_real, tile_rows)
    flops = 2 * n_pad * in_w * out_w
    bytes_accessed = 4 * (n_pad * (in_w + out_w) + in_w * out_w)
    res = pl.pallas_call(
        kernel,
        grid=(num_tiles,),
        in_specs=in_specs,
        out_specs=tuple(out_specs),
        out_shape=tuple(out_shape),
        compiler_params=pltpu.CompilerParams(dimension_semantics=("parallel",)),
        cost_estimate=pl.CostEstimate(flops=flops, transcendentals=0,
                                      bytes_accessed=bytes_accessed),
    )(*operands)
    if not isinstance(res, (tuple, list)):
        res = (res,)
    return res


def _gridded_forward(x_pad, packed, n_real, tile_rows):
    gam, bet = packed["gam"], packed["bet"]

    def weight_for(i):
        if i == 0:
            return packed["w0"]
        if i == 12:
            return packed["w12"]
        return packed["wmid"][i - 1]

    a = x_pad
    codes = None
    affine = None
    apply_relu = False
    apply_mask = False
    bi = 0
    for i in range(N_LINEAR):
        feeds_bn = i not in (5, 12)               # Linears 5 (codes) / 12 (decoded): no BN
        bias = packed["bc"] if i == 5 else (packed["bd"] if i == 12 else None)
        outs = _stage_call(a, weight_for(i), affine, bias,
                           apply_relu=apply_relu, apply_mask=apply_mask,
                           want_stats=feeds_bn, n_real=n_real, tile_rows=tile_rows)
        y = outs[0]
        if i == 5:
            codes = y
        if feeds_bn:
            # Finalize the BN stats for this layer; fold gamma/beta into scale/shift that
            # the next stage applies to its input tiles.
            s = jnp.sum(outs[1], axis=0)[0]                     # (128,)
            sq = jnp.sum(outs[2], axis=0)[0]
            mean = s / n_real
            var = jnp.maximum(sq / n_real - mean * mean, 0.0)
            scale = gam[bi] * lax.rsqrt(var + EPS)
            shift = bet[bi] - mean * scale
            affine = jnp.stack([scale, shift], axis=0)          # (2, 128)
            apply_relu = True
            apply_mask = True
            bi += 1
        else:
            affine = None
            apply_relu = False
            apply_mask = (i == 5)   # padded rows of codes carry the bias -> mask at stage 6
        a = y
    return codes, a                 # codes slab (n_pad, 128), decoded (n_pad, 640)


# -----------------------------------------------------------------------------
# Parameters
# -----------------------------------------------------------------------------
def init_params(key):
    """Logical (PyTorch-shaped) params: Linear weights [in,out] + bias, BN gamma/beta."""
    p = {"w": [], "b": [], "gamma": [], "beta": []}
    for fin, fout in ALL_DIMS:
        key, kw, kb = jax.random.split(key, 3)
        bound = 1.0 / float(fin) ** 0.5
        p["w"].append(jax.random.uniform(kw, (fin, fout), jnp.float32, -bound, bound))
        p["b"].append(jax.random.uniform(kb, (fout,), jnp.float32, -bound, bound))
    bn_feats = [d[1] for d in ENC_DIMS[:-1]] + [d[1] for d in DEC_DIMS[:-1]]
    for f in bn_feats:
        p["gamma"].append(jnp.ones((f,), jnp.float32))
        p["beta"].append(jnp.zeros((f,), jnp.float32))
    return p


def pack_params(params):
    """Pad + pack params for the kernels (f32, 128-lane padded, biases of BN-fed Linears
    dropped because they cancel against the training-mode batch-mean subtraction)."""
    ws = []
    for (fin, fout), w in zip(ALL_DIMS, params["w"]):
        fp, op = _round_up(fin, LANE), _round_up(fout, LANE)
        ws.append(jnp.zeros((fp, op), jnp.float32).at[:fin, :fout].set(w))
    packed = {
        "w0": ws[0],                              # (640, 128)
        "wmid": jnp.stack(ws[1:12], axis=0),      # (11, 128, 128) packed slab
        "w12": ws[12],                            # (128, 640)
        "gam": jnp.ones((16, LANE), jnp.float32),
        "bet": jnp.zeros((16, LANE), jnp.float32),
        "bc": jnp.zeros((1, LANE), jnp.float32).at[0, :32].set(params["b"][5]),
        "bd": params["b"][12].reshape(1, 640),
    }
    for i, (g, b) in enumerate(zip(params["gamma"], params["beta"])):
        packed["gam"] = packed["gam"].at[i, : g.shape[0]].set(g)
        packed["bet"] = packed["bet"].at[i, : b.shape[0]].set(b)
    return packed


# -----------------------------------------------------------------------------
# Wrapper
# -----------------------------------------------------------------------------
@jax.jit
def autoencoder_forward(x, packed):
    n = x.shape[0]
    x = x.astype(jnp.float32)
    if n <= FUSED_MAX_ROWS:
        # Latency path: whole batch resident; rows padded only to the sublane (8).
        n_pad = _round_up(max(n, SUBLANE), SUBLANE)
        x_pad = jnp.pad(x, ((0, n_pad - n), (0, 0)))
        codes_pad, dec_pad = _fused_forward(x_pad, packed, n)
    else:
        # Throughput path: gridded two-pass BN, 256-row tiles, bounded VMEM.
        n_pad = _round_up(n, ROW_TILE)
        x_pad = jnp.pad(x, ((0, n_pad - n), (0, 0)))
        codes_pad, dec_pad = _gridded_forward(x_pad, packed, n, ROW_TILE)
    return codes_pad[:n, :32], dec_pad[:n, :]


# -----------------------------------------------------------------------------
# Pure-JAX f32 reference (PyTorch training-mode BatchNorm1d semantics)
# -----------------------------------------------------------------------------
def reference_forward(x, p):
    hp = jax.lax.Precision.HIGHEST

    def bn_relu(h, g, b):
        mean = jnp.mean(h, axis=0, keepdims=True)
        var = jnp.mean(jnp.square(h - mean), axis=0, keepdims=True)   # biased variance
        return jnp.maximum((h - mean) * lax.rsqrt(var + EPS) * g + b, 0.0)

    h = x
    li = bi = 0
    for _ in range(len(ENC_DIMS) - 1):
        h = jnp.dot(h, p["w"][li], precision=hp) + p["b"][li]; li += 1
        h = bn_relu(h, p["gamma"][bi], p["beta"][bi]); bi += 1
    codes = jnp.dot(h, p["w"][li], precision=hp) + p["b"][li]; li += 1
    h = codes
    for _ in range(len(DEC_DIMS) - 1):
        h = jnp.dot(h, p["w"][li], precision=hp) + p["b"][li]; li += 1
        h = bn_relu(h, p["gamma"][bi], p["beta"][bi]); bi += 1
    return codes, jnp.dot(h, p["w"][li], precision=hp) + p["b"][li]


def _check(name, got, want, atol, rtol):
    assert got.shape == want.shape, (name, got.shape, want.shape)
    assert bool(jnp.all(jnp.isfinite(got))), name
    err = float(jnp.max(jnp.abs(got - want)))
    assert bool(jnp.allclose(got, want, atol=atol, rtol=rtol)), (name, err)


if __name__ == "__main__":
    key = jax.random.PRNGKey(0)
    k_small, k_big, k_p = jax.random.split(key, 3)
    params = init_params(k_p)
    packed = pack_params(params)

    # Small batch -> fused single-call (latency) path.
    x_small = jax.random.normal(k_small, (8, 640), dtype=jnp.float32)
    codes, decoded = autoencoder_forward(x_small, packed)
    jax.block_until_ready((codes, decoded))
    assert codes.shape == (8, 32) and decoded.shape == (8, 640)
    c_ref, d_ref = reference_forward(x_small, params)
    _check("codes/fused", codes, c_ref, 2e-2, 2e-2)
    _check("decoded/fused", decoded, d_ref, 2e-2, 2e-2)

    # Larger batch (not a multiple of the 256-row tile) -> gridded two-pass-BN path.
    x_big = jax.random.normal(k_big, (1000, 640), dtype=jnp.float32)
    codes_b, dec_b = autoencoder_forward(x_big, packed)
    jax.block_until_ready((codes_b, dec_b))
    assert codes_b.shape == (1000, 32) and dec_b.shape == (1000, 640)
    cb_ref, db_ref = reference_forward(x_big, params)
    _check("codes/gridded", codes_b, cb_ref, 2e-2, 2e-2)
    _check("decoded/gridded", dec_b, db_ref, 2e-2, 2e-2)

    print("KERNEL_OK")
</pallas_src>

<mosaic_0001>
module attributes {stable_mosaic.version = 11 : i64} {
  func.func @kernel(%arg0: memref<8x640xf32, #tpu.memory_space<vmem>>, %arg1: memref<640x128xf32, #tpu.memory_space<vmem>>, %arg2: memref<11x128x128xf32, #tpu.memory_space<vmem>>, %arg3: memref<128x640xf32, #tpu.memory_space<vmem>>, %arg4: memref<16x128xf32, #tpu.memory_space<vmem>>, %arg5: memref<16x128xf32, #tpu.memory_space<vmem>>, %arg6: memref<1x128xf32, #tpu.memory_space<vmem>>, %arg7: memref<1x640xf32, #tpu.memory_space<vmem>>, %arg8: memref<8x128xf32, #tpu.memory_space<vmem>>, %arg9: memref<8x640xf32, #tpu.memory_space<vmem>>) attributes {dimension_semantics = [], scalar_prefetch = 0 : i64, scratch_operands = 0 : i64, tpu.core_type = #tpu.core_type<tc>} {
    %0 = tpu.iota {dimensions = array<i32: 0>} : vector<8x128xi32>
    %c8_i32 = arith.constant 8 : i32
    %1 = vector.broadcast %c8_i32 : i32 to vector<8x128xi32>
    %2 = arith.cmpi slt, %0, %1 : vector<8x128xi32>
    %c0 = arith.constant 0 : index
    %c0_0 = arith.constant 0 : index
    %3 = vector.load %arg4[%c0, %c0_0] : memref<16x128xf32, #tpu.memory_space<vmem>>, vector<16x128xf32>
    %c0_1 = arith.constant 0 : index
    %c0_2 = arith.constant 0 : index
    %4 = vector.load %arg5[%c0_1, %c0_2] : memref<16x128xf32, #tpu.memory_space<vmem>>, vector<16x128xf32>
    %c0_3 = arith.constant 0 : index
    %c0_4 = arith.constant 0 : index
    %5 = vector.load %arg0[%c0_3, %c0_4] : memref<8x640xf32, #tpu.memory_space<vmem>>, vector<8x640xf32>
    %c0_5 = arith.constant 0 : index
    %c0_6 = arith.constant 0 : index
    %6 = vector.load %arg1[%c0_5, %c0_6] : memref<640x128xf32, #tpu.memory_space<vmem>>, vector<640x128xf32>
    %cst = arith.constant dense<0.000000e+00> : vector<8x128xf32>
    %7 = tpu.matmul %5, %6, %cst {dimension_numbers = #tpu.dot_dimension_numbers<[1], [0], [0], [1], [0, 0, 1, 1], [], []>} : vector<8x640xf32>, vector<640x128xf32>, vector<8x128xf32> -> vector<8x128xf32>
    %cst_7 = arith.constant dense<0.000000e+00> : vector<128xf32>
    %8 = vector.multi_reduction <add>, %7, %cst_7 [0] : vector<8x128xf32> to vector<128xf32>
    %9 = vector.shape_cast %8 : vector<128xf32> to vector<1x128xf32>
    %cst_8 = arith.constant 1.250000e-01 : f32
    %10 = vector.broadcast %cst_8 : f32 to vector<1x128xf32>
    %11 = arith.mulf %9, %10 : vector<1x128xf32>
    %12 = arith.mulf %7, %7 : vector<8x128xf32>
    %cst_9 = arith.constant dense<0.000000e+00> : vector<128xf32>
    %13 = vector.multi_reduction <add>, %12, %cst_9 [0] : vector<8x128xf32> to vector<128xf32>
    %14 = vector.shape_cast %13 : vector<128xf32> to vector<1x128xf32>
    %cst_10 = arith.constant 1.250000e-01 : f32
    %15 = vector.broadcast %cst_10 : f32 to vector<1x128xf32>
    %16 = arith.mulf %14, %15 : vector<1x128xf32>
    %17 = arith.mulf %11, %11 : vector<1x128xf32>
    %18 = arith.subf %16, %17 : vector<1x128xf32>
    %cst_11 = arith.constant 0.000000e+00 : f32
    %19 = vector.broadcast %cst_11 : f32 to vector<1x128xf32>
    %20 = arith.maximumf %18, %19 : vector<1x128xf32>
    %21 = vector.extract_strided_slice %3 {offsets = [0, 0], sizes = [1, 128], strides = [1, 1]} : vector<16x128xf32> to vector<1x128xf32>
    %cst_12 = arith.constant 9.99999974E-6 : f32
    %22 = vector.broadcast %cst_12 : f32 to vector<1x128xf32>
    %23 = arith.addf %20, %22 : vector<1x128xf32>
    %24 = math.rsqrt %23 : vector<1x128xf32>
    %25 = arith.mulf %21, %24 : vector<1x128xf32>
    %26 = vector.extract_strided_slice %4 {offsets = [0, 0], sizes = [1, 128], strides = [1, 1]} : vector<16x128xf32> to vector<1x128xf32>
    %27 = arith.mulf %11, %25 : vector<1x128xf32>
    %28 = arith.subf %26, %27 : vector<1x128xf32>
    %29 = vector.broadcast %25 : vector<1x128xf32> to vector<8x128xf32>
    %30 = arith.mulf %7, %29 : vector<8x128xf32>
    %31 = vector.broadcast %28 : vector<1x128xf32> to vector<8x128xf32>
    %32 = arith.addf %30, %31 : vector<8x128xf32>
    %cst_13 = arith.constant 0.000000e+00 : f32
    %33 = vector.broadcast %cst_13 : f32 to vector<8x128xf32>
    %34 = arith.maximumf %32, %33 : vector<8x128xf32>
    %cst_14 = arith.constant 0.000000e+00 : f32
    %35 = vector.broadcast %cst_14 : f32 to vector<8x128xf32>
    %36 = arith.select %2, %34, %35 : vector<8x128xi1>, vector<8x128xf32>
    %c0_15 = arith.constant 0 : index
    %c0_16 = arith.constant 0 : index
    %c0_17 = arith.constant 0 : index
    %37 = vector.load %arg2[%c0_15, %c0_16, %c0_17] : memref<11x128x128xf32, #tpu.memory_space<vmem>>, vector<1x128x128xf32>
    %38 = vector.shape_cast %37 : vector<1x128x128xf32> to vector<128x128xf32>
    %cst_18 = arith.constant dense<0.000000e+00> : vector<8x128xf32>
    %39 = tpu.matmul %36, %38, %cst_18 {dimension_numbers = #tpu.dot_dimension_numbers<[1], [0], [0], [1], [0, 0, 1, 1], [], []>} : vector<8x128xf32>, vector<128x128xf32>, vector<8x128xf32> -> vector<8x128xf32>
    %cst_19 = arith.constant dense<0.000000e+00> : vector<128xf32>
    %40 = vector.multi_reduction <add>, %39, %cst_19 [0] : vector<8x128xf32> to vector<128xf32>
    %41 = vector.shape_cast %40 : vector<128xf32> to vector<1x128xf32>
    %cst_20 = arith.constant 1.250000e-01 : f32
    %42 = vector.broadcast %cst_20 : f32 to vector<1x128xf32>
    %43 = arith.mulf %41, %42 : vector<1x128xf32>
    %44 = arith.mulf %39, %39 : vector<8x128xf32>
    %cst_21 = arith.constant dense<0.000000e+00> : vector<128xf32>
    %45 = vector.multi_reduction <add>, %44, %cst_21 [0] : vector<8x128xf32> to vector<128xf32>
    %46 = vector.shape_cast %45 : vector<128xf32> to vector<1x128xf32>
    %cst_22 = arith.constant 1.250000e-01 : f32
    %47 = vector.broadcast %cst_22 : f32 to vector<1x128xf32>
    %48 = arith.mulf %46, %47 : vector<1x128xf32>
    %49 = arith.mulf %43, %43 : vector<1x128xf32>
    %50 = arith.subf %48, %49 : vector<1x128xf32>
    %cst_23 = arith.constant 0.000000e+00 : f32
    %51 = vector.broadcast %cst_23 : f32 to vector<1x128xf32>
    %52 = arith.maximumf %50, %51 : vector<1x128xf32>
    %53 = vector.extract_strided_slice %3 {offsets = [1, 0], sizes = [1, 128], strides = [1, 1]} : vector<16x128xf32> to vector<1x128xf32>
    %cst_24 = arith.constant 9.99999974E-6 : f32
    %54 = vector.broadcast %cst_24 : f32 to vector<1x128xf32>
    %55 = arith.addf %52, %54 : vector<1x128xf32>
    %56 = math.rsqrt %55 : vector<1x128xf32>
    %57 = arith.mulf %53, %56 : vector<1x128xf32>
    %58 = vector.extract_strided_slice %4 {offsets = [1, 0], sizes = [1, 128], strides = [1, 1]} : vector<16x128xf32> to vector<1x128xf32>
    %59 = arith.mulf %43, %57 : vector<1x128xf32>
    %60 = arith.subf %58, %59 : vector<1x128xf32>
    %61 = vector.broadcast %57 : vector<1x128xf32> to vector<8x128xf32>
    %62 = arith.mulf %39, %61 : vector<8x128xf32>
    %63 = vector.broadcast %60 : vector<1x128xf32> to vector<8x128xf32>
    %64 = arith.addf %62, %63 : vector<8x128xf32>
    %cst_25 = arith.constant 0.000000e+00 : f32
    %65 = vector.broadcast %cst_25 : f32 to vector<8x128xf32>
    %66 = arith.maximumf %64, %65 : vector<8x128xf32>
    %cst_26 = arith.constant 0.000000e+00 : f32
    %67 = vector.broadcast %cst_26 : f32 to vector<8x128xf32>
    %68 = arith.select %2, %66, %67 : vector<8x128xi1>, vector<8x128xf32>
    %c1 = arith.constant 1 : index
    %c0_27 = arith.constant 0 : index
    %c0_28 = arith.constant 0 : index
    %69 = vector.load %arg2[%c1, %c0_27, %c0_28] : memref<11x128x128xf32, #tpu.memory_space<vmem>>, vector<1x128x128xf32>
    %70 = vector.shape_cast %69 : vector<1x128x128xf32> to vector<128x128xf32>
    %cst_29 = arith.constant dense<0.000000e+00> : vector<8x128xf32>
    %71 = tpu.matmul %68, %70, %cst_29 {dimension_numbers = #tpu.dot_dimension_numbers<[1], [0], [0], [1], [0, 0, 1, 1], [], []>} : vector<8x128xf32>, vector<128x128xf32>, vector<8x128xf32> -> vector<8x128xf32>
    %cst_30 = arith.constant dense<0.000000e+00> : vector<128xf32>
    %72 = vector.multi_reduction <add>, %71, %cst_30 [0] : vector<8x128xf32> to vector<128xf32>
    %73 = vector.shape_cast %72 : vector<128xf32> to vector<1x128xf32>
    %cst_31 = arith.constant 1.250000e-01 : f32
    %74 = vector.broadcast %cst_31 : f32 to vector<1x128xf32>
    %75 = arith.mulf %73, %74 : vector<1x128xf32>
    %76 = arith.mulf %71, %71 : vector<8x128xf32>
    %cst_32 = arith.constant dense<0.000000e+00> : vector<128xf32>
    %77 = vector.multi_reduction <add>, %76, %cst_32 [0] : vector<8x128xf32> to vector<128xf32>
    %78 = vector.shape_cast %77 : vector<128xf32> to vector<1x128xf32>
    %cst_33 = arith.constant 1.250000e-01 : f32
    %79 = vector.broadcast %cst_33 : f32 to vector<1x128xf32>
    %80 = arith.mulf %78, %79 : vector<1x128xf32>
    %81 = arith.mulf %75, %75 : vector<1x128xf32>
    %82 = arith.subf %80, %81 : vector<1x128xf32>
    %cst_34 = arith.constant 0.000000e+00 : f32
    %83 = vector.broadcast %cst_34 : f32 to vector<1x128xf32>
    %84 = arith.maximumf %82, %83 : vector<1x128xf32>
    %85 = vector.extract_strided_slice %3 {offsets = [2, 0], sizes = [1, 128], strides = [1, 1]} : vector<16x128xf32> to vector<1x128xf32>
    %cst_35 = arith.constant 9.99999974E-6 : f32
    %86 = vector.broadcast %cst_35 : f32 to vector<1x128xf32>
    %87 = arith.addf %84, %86 : vector<1x128xf32>
    %88 = math.rsqrt %87 : vector<1x128xf32>
    %89 = arith.mulf %85, %88 : vector<1x128xf32>
    %90 = vector.extract_strided_slice %4 {offsets = [2, 0], sizes = [1, 128], strides = [1, 1]} : vector<16x128xf32> to vector<1x128xf32>
    %91 = arith.mulf %75, %89 : vector<1x128xf32>
    %92 = arith.subf %90, %91 : vector<1x128xf32>
    %93 = vector.broadcast %89 : vector<1x128xf32> to vector<8x128xf32>
    %94 = arith.mulf %71, %93 : vector<8x128xf32>
    %95 = vector.broadcast %92 : vector<1x128xf32> to vector<8x128xf32>
    %96 = arith.addf %94, %95 : vector<8x128xf32>
    %cst_36 = arith.constant 0.000000e+00 : f32
    %97 = vector.broadcast %cst_36 : f32 to vector<8x128xf32>
    %98 = arith.maximumf %96, %97 : vector<8x128xf32>
    %cst_37 = arith.constant 0.000000e+00 : f32
    %99 = vector.broadcast %cst_37 : f32 to vector<8x128xf32>
    %100 = arith.select %2, %98, %99 : vector<8x128xi1>, vector<8x128xf32>
    %c2 = arith.constant 2 : index
    %c0_38 = arith.constant 0 : index
    %c0_39 = arith.constant 0 : index
    %101 = vector.load %arg2[%c2, %c0_38, %c0_39] : memref<11x128x128xf32, #tpu.memory_space<vmem>>, vector<1x128x128xf32>
    %102 = vector.shape_cast %101 : vector<1x128x128xf32> to vector<128x128xf32>
    %cst_40 = arith.constant dense<0.000000e+00> : vector<8x128xf32>
    %103 = tpu.matmul %100, %102, %cst_40 {dimension_numbers = #tpu.dot_dimension_numbers<[1], [0], [0], [1], [0, 0, 1, 1], [], []>} : vector<8x128xf32>, vector<128x128xf32>, vector<8x128xf32> -> vector<8x128xf32>
    %cst_41 = arith.constant dense<0.000000e+00> : vector<128xf32>
    %104 = vector.multi_reduction <add>, %103, %cst_41 [0] : vector<8x128xf32> to vector<128xf32>
    %105 = vector.shape_cast %104 : vector<128xf32> to vector<1x128xf32>
    %cst_42 = arith.constant 1.250000e-01 : f32
    %106 = vector.broadcast %cst_42 : f32 to vector<1x128xf32>
    %107 = arith.mulf %105, %106 : vector<1x128xf32>
    %108 = arith.mulf %103, %103 : vector<8x128xf32>
    %cst_43 = arith.constant dense<0.000000e+00> : vector<128xf32>
    %109 = vector.multi_reduction <add>, %108, %cst_43 [0] : vector<8x128xf32> to vector<128xf32>
    %110 = vector.shape_cast %109 : vector<128xf32> to vector<1x128xf32>
    %cst_44 = arith.constant 1.250000e-01 : f32
    %111 = vector.broadcast %cst_44 : f32 to vector<1x128xf32>
    %112 = arith.mulf %110, %111 : vector<1x128xf32>
    %113 = arith.mulf %107, %107 : vector<1x128xf32>
    %114 = arith.subf %112, %113 : vector<1x128xf32>
    %cst_45 = arith.constant 0.000000e+00 : f32
    %115 = vector.broadcast %cst_45 : f32 to vector<1x128xf32>
    %116 = arith.maximumf %114, %115 : vector<1x128xf32>
    %117 = vector.extract_strided_slice %3 {offsets = [3, 0], sizes = [1, 128], strides = [1, 1]} : vector<16x128xf32> to vector<1x128xf32>
    %cst_46 = arith.constant 9.99999974E-6 : f32
    %118 = vector.broadcast %cst_46 : f32 to vector<1x128xf32>
    %119 = arith.addf %116, %118 : vector<1x128xf32>
    %120 = math.rsqrt %119 : vector<1x128xf32>
    %121 = arith.mulf %117, %120 : vector<1x128xf32>
    %122 = vector.extract_strided_slice %4 {offsets = [3, 0], sizes = [1, 128], strides = [1, 1]} : vector<16x128xf32> to vector<1x128xf32>
    %123 = arith.mulf %107, %121 : vector<1x128xf32>
    %124 = arith.subf %122, %123 : vector<1x128xf32>
    %125 = vector.broadcast %121 : vector<1x128xf32> to vector<8x128xf32>
    %126 = arith.mulf %103, %125 : vector<8x128xf32>
    %127 = vector.broadcast %124 : vector<1x128xf32> to vector<8x128xf32>
    %128 = arith.addf %126, %127 : vector<8x128xf32>
    %cst_47 = arith.constant 0.000000e+00 : f32
    %129 = vector.broadcast %cst_47 : f32 to vector<8x128xf32>
    %130 = arith.maximumf %128, %129 : vector<8x128xf32>
    %cst_48 = arith.constant 0.000000e+00 : f32
    %131 = vector.broadcast %cst_48 : f32 to vector<8x128xf32>
    %132 = arith.select %2, %130, %131 : vector<8x128xi1>, vector<8x128xf32>
    %c3 = arith.constant 3 : index
    %c0_49 = arith.constant 0 : index
    %c0_50 = arith.constant 0 : index
    %133 = vector.load %arg2[%c3, %c0_49, %c0_50] : memref<11x128x128xf32, #tpu.memory_space<vmem>>, vector<1x128x128xf32>
    %134 = vector.shape_cast %133 : vector<1x128x128xf32> to vector<128x128xf32>
    %cst_51 = arith.constant dense<0.000000e+00> : vector<8x128xf32>
    %135 = tpu.matmul %132, %134, %cst_51 {dimension_numbers = #tpu.dot_dimension_numbers<[1], [0], [0], [1], [0, 0, 1, 1], [], []>} : vector<8x128xf32>, vector<128x128xf32>, vector<8x128xf32> -> vector<8x128xf32>
    %cst_52 = arith.constant dense<0.000000e+00> : vector<128xf32>
    %136 = vector.multi_reduction <add>, %135, %cst_52 [0] : vector<8x128xf32> to vector<128xf32>
    %137 = vector.shape_cast %136 : vector<128xf32> to vector<1x128xf32>
    %cst_53 = arith.constant 1.250000e-01 : f32
    %138 = vector.broadcast %cst_53 : f32 to vector<1x128xf32>
    %139 = arith.mulf %137, %138 : vector<1x128xf32>
    %140 = arith.mulf %135, %135 : vector<8x128xf32>
    %cst_54 = arith.constant dense<0.000000e+00> : vector<128xf32>
    %141 = vector.multi_reduction <add>, %140, %cst_54 [0] : vector<8x128xf32> to vector<128xf32>
    %142 = vector.shape_cast %141 : vector<128xf32> to vector<1x128xf32>
    %cst_55 = arith.constant 1.250000e-01 : f32
    %143 = vector.broadcast %cst_55 : f32 to vector<1x128xf32>
    %144 = arith.mulf %142, %143 : vector<1x128xf32>
    %145 = arith.mulf %139, %139 : vector<1x128xf32>
    %146 = arith.subf %144, %145 : vector<1x128xf32>
    %cst_56 = arith.constant 0.000000e+00 : f32
    %147 = vector.broadcast %cst_56 : f32 to vector<1x128xf32>
    %148 = arith.maximumf %146, %147 : vector<1x128xf32>
    %149 = vector.extract_strided_slice %3 {offsets = [4, 0], sizes = [1, 128], strides = [1, 1]} : vector<16x128xf32> to vector<1x128xf32>
    %cst_57 = arith.constant 9.99999974E-6 : f32
    %150 = vector.broadcast %cst_57 : f32 to vector<1x128xf32>
    %151 = arith.addf %148, %150 : vector<1x128xf32>
    %152 = math.rsqrt %151 : vector<1x128xf32>
    %153 = arith.mulf %149, %152 : vector<1x128xf32>
    %154 = vector.extract_strided_slice %4 {offsets = [4, 0], sizes = [1, 128], strides = [1, 1]} : vector<16x128xf32> to vector<1x128xf32>
    %155 = arith.mulf %139, %153 : vector<1x128xf32>
    %156 = arith.subf %154, %155 : vector<1x128xf32>
    %157 = vector.broadcast %153 : vector<1x128xf32> to vector<8x128xf32>
    %158 = arith.mulf %135, %157 : vector<8x128xf32>
    %159 = vector.broadcast %156 : vector<1x128xf32> to vector<8x128xf32>
    %160 = arith.addf %158, %159 : vector<8x128xf32>
    %cst_58 = arith.constant 0.000000e+00 : f32
    %161 = vector.broadcast %cst_58 : f32 to vector<8x128xf32>
    %162 = arith.maximumf %160, %161 : vector<8x128xf32>
    %cst_59 = arith.constant 0.000000e+00 : f32
    %163 = vector.broadcast %cst_59 : f32 to vector<8x128xf32>
    %164 = arith.select %2, %162, %163 : vector<8x128xi1>, vector<8x128xf32>
    %c4 = arith.constant 4 : index
    %c0_60 = arith.constant 0 : index
    %c0_61 = arith.constant 0 : index
    %165 = vector.load %arg2[%c4, %c0_60, %c0_61] : memref<11x128x128xf32, #tpu.memory_space<vmem>>, vector<1x128x128xf32>
    %166 = vector.shape_cast %165 : vector<1x128x128xf32> to vector<128x128xf32>
    %cst_62 = arith.constant dense<0.000000e+00> : vector<8x128xf32>
    %167 = tpu.matmul %164, %166, %cst_62 {dimension_numbers = #tpu.dot_dimension_numbers<[1], [0], [0], [1], [0, 0, 1, 1], [], []>} : vector<8x128xf32>, vector<128x128xf32>, vector<8x128xf32> -> vector<8x128xf32>
    %c0_63 = arith.constant 0 : index
    %c0_64 = arith.constant 0 : index
    %168 = vector.load %arg6[%c0_63, %c0_64] : memref<1x128xf32, #tpu.memory_space<vmem>>, vector<1x128xf32>
    %169 = vector.broadcast %168 : vector<1x128xf32> to vector<8x128xf32>
    %170 = arith.addf %167, %169 : vector<8x128xf32>
    %c0_65 = arith.constant 0 : index
    %c0_66 = arith.constant 0 : index
    %171 = vector.load %arg8[%c0_65, %c0_66] : memref<8x128xf32, #tpu.memory_space<vmem>>, vector<8x128xf32>
    tpu.vector_store %arg8[%c0_65, %c0_66], %170 {strides = array<i32>} : memref<8x128xf32, #tpu.memory_space<vmem>>, vector<8x128xf32>,
    %cst_67 = arith.constant 0.000000e+00 : f32
    %172 = vector.broadcast %cst_67 : f32 to vector<8x128xf32>
    %173 = arith.select %2, %170, %172 : vector<8x128xi1>, vector<8x128xf32>
    %c5 = arith.constant 5 : index
    %c0_68 = arith.constant 0 : index
    %c0_69 = arith.constant 0 : index
    %174 = vector.load %arg2[%c5, %c0_68, %c0_69] : memref<11x128x128xf32, #tpu.memory_space<vmem>>, vector<1x128x128xf32>
    %175 = vector.shape_cast %174 : vector<1x128x128xf32> to vector<128x128xf32>
    %cst_70 = arith.constant dense<0.000000e+00> : vector<8x128xf32>
    %176 = tpu.matmul %173, %175, %cst_70 {dimension_numbers = #tpu.dot_dimension_numbers<[1], [0], [0], [1], [0, 0, 1, 1], [], []>} : vector<8x128xf32>, vector<128x128xf32>, vector<8x128xf32> -> vector<8x128xf32>
    %cst_71 = arith.constant dense<0.000000e+00> : vector<128xf32>
    %177 = vector.multi_reduction <add>, %176, %cst_71 [0] : vector<8x128xf32> to vector<128xf32>
    %178 = vector.shape_cast %177 : vector<128xf32> to vector<1x128xf32>
    %cst_72 = arith.constant 1.250000e-01 : f32
    %179 = vector.broadcast %cst_72 : f32 to vector<1x128xf32>
    %180 = arith.mulf %178, %179 : vector<1x128xf32>
    %181 = arith.mulf %176, %176 : vector<8x128xf32>
    %cst_73 = arith.constant dense<0.000000e+00> : vector<128xf32>
    %182 = vector.multi_reduction <add>, %181, %cst_73 [0] : vector<8x128xf32> to vector<128xf32>
    %183 = vector.shape_cast %182 : vector<128xf32> to vector<1x128xf32>
    %cst_74 = arith.constant 1.250000e-01 : f32
    %184 = vector.broadcast %cst_74 : f32 to vector<1x128xf32>
    %185 = arith.mulf %183, %184 : vector<1x128xf32>
    %186 = arith.mulf %180, %180 : vector<1x128xf32>
    %187 = arith.subf %185, %186 : vector<1x128xf32>
    %cst_75 = arith.constant 0.000000e+00 : f32
    %188 = vector.broadcast %cst_75 : f32 to vector<1x128xf32>
    %189 = arith.maximumf %187, %188 : vector<1x128xf32>
    %190 = vector.extract_strided_slice %3 {offsets = [5, 0], sizes = [1, 128], strides = [1, 1]} : vector<16x128xf32> to vector<1x128xf32>
    %cst_76 = arith.constant 9.99999974E-6 : f32
    %191 = vector.broadcast %cst_76 : f32 to vector<1x128xf32>
    %192 = arith.addf %189, %191 : vector<1x128xf32>
    %193 = math.rsqrt %192 : vector<1x128xf32>
    %194 = arith.mulf %190, %193 : vector<1x128xf32>
    %195 = vector.extract_strided_slice %4 {offsets = [5, 0], sizes = [1, 128], strides = [1, 1]} : vector<16x128xf32> to vector<1x128xf32>
    %196 = arith.mulf %180, %194 : vector<1x128xf32>
    %197 = arith.subf %195, %196 : vector<1x128xf32>
    %198 = vector.broadcast %194 : vector<1x128xf32> to vector<8x128xf32>
    %199 = arith.mulf %176, %198 : vector<8x128xf32>
    %200 = vector.broadcast %197 : vector<1x128xf32> to vector<8x128xf32>
    %201 = arith.addf %199, %200 : vector<8x128xf32>
    %cst_77 = arith.constant 0.000000e+00 : f32
    %202 = vector.broadcast %cst_77 : f32 to vector<8x128xf32>
    %203 = arith.maximumf %201, %202 : vector<8x128xf32>
    %cst_78 = arith.constant 0.000000e+00 : f32
    %204 = vector.broadcast %cst_78 : f32 to vector<8x128xf32>
    %205 = arith.select %2, %203, %204 : vector<8x128xi1>, vector<8x128xf32>
    %c6 = arith.constant 6 : index
    %c0_79 = arith.constant 0 : index
    %c0_80 = arith.constant 0 : index
    %206 = vector.load %arg2[%c6, %c0_79, %c0_80] : memref<11x128x128xf32, #tpu.memory_space<vmem>>, vector<1x128x128xf32>
    %207 = vector.shape_cast %206 : vector<1x128x128xf32> to vector<128x128xf32>
    %cst_81 = arith.constant dense<0.000000e+00> : vector<8x128xf32>
    %208 = tpu.matmul %205, %207, %cst_81 {dimension_numbers = #tpu.dot_dimension_numbers<[1], [0], [0], [1], [0, 0, 1, 1], [], []>} : vector<8x128xf32>, vector<128x128xf32>, vector<8x128xf32> -> vector<8x128xf32>
    %cst_82 = arith.constant dense<0.000000e+00> : vector<128xf32>
    %209 = vector.multi_reduction <add>, %208, %cst_82 [0] : vector<8x128xf32> to vector<128xf32>
    %210 = vector.shape_cast %209 : vector<128xf32> to vector<1x128xf32>
    %cst_83 = arith.constant 1.250000e-01 : f32
    %211 = vector.broadcast %cst_83 : f32 to vector<1x128xf32>
    %212 = arith.mulf %210, %211 : vector<1x128xf32>
    %213 = arith.mulf %208, %208 : vector<8x128xf32>
    %cst_84 = arith.constant dense<0.000000e+00> : vector<128xf32>
    %214 = vector.multi_reduction <add>, %213, %cst_84 [0] : vector<8x128xf32> to vector<128xf32>
    %215 = vector.shape_cast %214 : vector<128xf32> to vector<1x128xf32>
    %cst_85 = arith.constant 1.250000e-01 : f32
    %216 = vector.broadcast %cst_85 : f32 to vector<1x128xf32>
    %217 = arith.mulf %215, %216 : vector<1x128xf32>
    %218 = arith.mulf %212, %212 : vector<1x128xf32>
    %219 = arith.subf %217, %218 : vector<1x128xf32>
    %cst_86 = arith.constant 0.000000e+00 : f32
    %220 = vector.broadcast %cst_86 : f32 to vector<1x128xf32>
    %221 = arith.maximumf %219, %220 : vector<1x128xf32>
    %222 = vector.extract_strided_slice %3 {offsets = [6, 0], sizes = [1, 128], strides = [1, 1]} : vector<16x128xf32> to vector<1x128xf32>
    %cst_87 = arith.constant 9.99999974E-6 : f32
    %223 = vector.broadcast %cst_87 : f32 to vector<1x128xf32>
    %224 = arith.addf %221, %223 : vector<1x128xf32>
    %225 = math.rsqrt %224 : vector<1x128xf32>
    %226 = arith.mulf %222, %225 : vector<1x128xf32>
    %227 = vector.extract_strided_slice %4 {offsets = [6, 0], sizes = [1, 128], strides = [1, 1]} : vector<16x128xf32> to vector<1x128xf32>
    %228 = arith.mulf %212, %226 : vector<1x128xf32>
    %229 = arith.subf %227, %228 : vector<1x128xf32>
    %230 = vector.broadcast %226 : vector<1x128xf32> to vector<8x128xf32>
    %231 = arith.mulf %208, %230 : vector<8x128xf32>
    %232 = vector.broadcast %229 : vector<1x128xf32> to vector<8x128xf32>
    %233 = arith.addf %231, %232 : vector<8x128xf32>
    %cst_88 = arith.constant 0.000000e+00 : f32
    %234 = vector.broadcast %cst_88 : f32 to vector<8x128xf32>
    %235 = arith.maximumf %233, %234 : vector<8x128xf32>
    %cst_89 = arith.constant 0.000000e+00 : f32
    %236 = vector.broadcast %cst_89 : f32 to vector<8x128xf32>
    %237 = arith.select %2, %235, %236 : vector<8x128xi1>, vector<8x128xf32>
    %c7 = arith.constant 7 : index
    %c0_90 = arith.constant 0 : index
    %c0_91 = arith.constant 0 : index
    %238 = vector.load %arg2[%c7, %c0_90, %c0_91] : memref<11x128x128xf32, #tpu.memory_space<vmem>>, vector<1x128x128xf32>
    %239 = vector.shape_cast %238 : vector<1x128x128xf32> to vector<128x128xf32>
    %cst_92 = arith.constant dense<0.000000e+00> : vector<8x128xf32>
    %240 = tpu.matmul %237, %239, %cst_92 {dimension_numbers = #tpu.dot_dimension_numbers<[1], [0], [0], [1], [0, 0, 1, 1], [], []>} : vector<8x128xf32>, vector<128x128xf32>, vector<8x128xf32> -> vector<8x128xf32>
    %cst_93 = arith.constant dense<0.000000e+00> : vector<128xf32>
    %241 = vector.multi_reduction <add>, %240, %cst_93 [0] : vector<8x128xf32> to vector<128xf32>
    %242 = vector.shape_cast %241 : vector<128xf32> to vector<1x128xf32>
    %cst_94 = arith.constant 1.250000e-01 : f32
    %243 = vector.broadcast %cst_94 : f32 to vector<1x128xf32>
    %244 = arith.mulf %242, %243 : vector<1x128xf32>
    %245 = arith.mulf %240, %240 : vector<8x128xf32>
    %cst_95 = arith.constant dense<0.000000e+00> : vector<128xf32>
    %246 = vector.multi_reduction <add>, %245, %cst_95 [0] : vector<8x128xf32> to vector<128xf32>
    %247 = vector.shape_cast %246 : vector<128xf32> to vector<1x128xf32>
    %cst_96 = arith.constant 1.250000e-01 : f32
    %248 = vector.broadcast %cst_96 : f32 to vector<1x128xf32>
    %249 = arith.mulf %247, %248 : vector<1x128xf32>
    %250 = arith.mulf %244, %244 : vector<1x128xf32>
    %251 = arith.subf %249, %250 : vector<1x128xf32>
    %cst_97 = arith.constant 0.000000e+00 : f32
    %252 = vector.broadcast %cst_97 : f32 to vector<1x128xf32>
    %253 = arith.maximumf %251, %252 : vector<1x128xf32>
    %254 = vector.extract_strided_slice %3 {offsets = [7, 0], sizes = [1, 128], strides = [1, 1]} : vector<16x128xf32> to vector<1x128xf32>
    %cst_98 = arith.constant 9.99999974E-6 : f32
    %255 = vector.broadcast %cst_98 : f32 to vector<1x128xf32>
    %256 = arith.addf %253, %255 : vector<1x128xf32>
    %257 = math.rsqrt %256 : vector<1x128xf32>
    %258 = arith.mulf %254, %257 : vector<1x128xf32>
    %259 = vector.extract_strided_slice %4 {offsets = [7, 0], sizes = [1, 128], strides = [1, 1]} : vector<16x128xf32> to vector<1x128xf32>
    %260 = arith.mulf %244, %258 : vector<1x128xf32>
    %261 = arith.subf %259, %260 : vector<1x128xf32>
    %262 = vector.broadcast %258 : vector<1x128xf32> to vector<8x128xf32>
    %263 = arith.mulf %240, %262 : vector<8x128xf32>
    %264 = vector.broadcast %261 : vector<1x128xf32> to vector<8x128xf32>
    %265 = arith.addf %263, %264 : vector<8x128xf32>
    %cst_99 = arith.constant 0.000000e+00 : f32
    %266 = vector.broadcast %cst_99 : f32 to vector<8x128xf32>
    %267 = arith.maximumf %265, %266 : vector<8x128xf32>
    %cst_100 = arith.constant 0.000000e+00 : f32
    %268 = vector.broadcast %cst_100 : f32 to vector<8x128xf32>
    %269 = arith.select %2, %267, %268 : vector<8x128xi1>, vector<8x128xf32>
    %c8 = arith.constant 8 : index
    %c0_101 = arith.constant 0 : index
    %c0_102 = arith.constant 0 : index
    %270 = vector.load %arg2[%c8, %c0_101, %c0_102] : memref<11x128x128xf32, #tpu.memory_space<vmem>>, vector<1x128x128xf32>
    %271 = vector.shape_cast %270 : vector<1x128x128xf32> to vector<128x128xf32>
    %cst_103 = arith.constant dense<0.000000e+00> : vector<8x128xf32>
    %272 = tpu.matmul %269, %271, %cst_103 {dimension_numbers = #tpu.dot_dimension_numbers<[1], [0], [0], [1], [0, 0, 1, 1], [], []>} : vector<8x128xf32>, vector<128x128xf32>, vector<8x128xf32> -> vector<8x128xf32>
    %cst_104 = arith.constant dense<0.000000e+00> : vector<128xf32>
    %273 = vector.multi_reduction <add>, %272, %cst_104 [0] : vector<8x128xf32> to vector<128xf32>
    %274 = vector.shape_cast %273 : vector<128xf32> to vector<1x128xf32>
    %cst_105 = arith.constant 1.250000e-01 : f32
    %275 = vector.broadcast %cst_105 : f32 to vector<1x128xf32>
    %276 = arith.mulf %274, %275 : vector<1x128xf32>
    %277 = arith.mulf %272, %272 : vector<8x128xf32>
    %cst_106 = arith.constant dense<0.000000e+00> : vector<128xf32>
    %278 = vector.multi_reduction <add>, %277, %cst_106 [0] : vector<8x128xf32> to vector<128xf32>
    %279 = vector.shape_cast %278 : vector<128xf32> to vector<1x128xf32>
    %cst_107 = arith.constant 1.250000e-01 : f32
    %280 = vector.broadcast %cst_107 : f32 to vector<1x128xf32>
    %281 = arith.mulf %279, %280 : vector<1x128xf32>
    %282 = arith.mulf %276, %276 : vector<1x128xf32>
    %283 = arith.subf %281, %282 : vector<1x128xf32>
    %cst_108 = arith.constant 0.000000e+00 : f32
    %284 = vector.broadcast %cst_108 : f32 to vector<1x128xf32>
    %285 = arith.maximumf %283, %284 : vector<1x128xf32>
    %286 = vector.extract_strided_slice %3 {offsets = [8, 0], sizes = [1, 128], strides = [1, 1]} : vector<16x128xf32> to vector<1x128xf32>
    %cst_109 = arith.constant 9.99999974E-6 : f32
    %287 = vector.broadcast %cst_109 : f32 to vector<1x128xf32>
    %288 = arith.addf %285, %287 : vector<1x128xf32>
    %289 = math.rsqrt %288 : vector<1x128xf32>
    %290 = arith.mulf %286, %289 : vector<1x128xf32>
    %291 = vector.extract_strided_slice %4 {offsets = [8, 0], sizes = [1, 128], strides = [1, 1]} : vector<16x128xf32> to vector<1x128xf32>
    %292 = arith.mulf %276, %290 : vector<1x128xf32>
    %293 = arith.subf %291, %292 : vector<1x128xf32>
    %294 = vector.broadcast %290 : vector<1x128xf32> to vector<8x128xf32>
    %295 = arith.mulf %272, %294 : vector<8x128xf32>
    %296 = vector.broadcast %293 : vector<1x128xf32> to vector<8x128xf32>
    %297 = arith.addf %295, %296 : vector<8x128xf32>
    %cst_110 = arith.constant 0.000000e+00 : f32
    %298 = vector.broadcast %cst_110 : f32 to vector<8x128xf32>
    %299 = arith.maximumf %297, %298 : vector<8x128xf32>
    %cst_111 = arith.constant 0.000000e+00 : f32
    %300 = vector.broadcast %cst_111 : f32 to vector<8x128xf32>
    %301 = arith.select %2, %299, %300 : vector<8x128xi1>, vector<8x128xf32>
    %c9 = arith.constant 9 : index
    %c0_112 = arith.constant 0 : index
    %c0_113 = arith.constant 0 : index
    %302 = vector.load %arg2[%c9, %c0_112, %c0_113] : memref<11x128x128xf32, #tpu.memory_space<vmem>>, vector<1x128x128xf32>
    %303 = vector.shape_cast %302 : vector<1x128x128xf32> to vector<128x128xf32>
    %cst_114 = arith.constant dense<0.000000e+00> : vector<8x128xf32>
    %304 = tpu.matmul %301, %303, %cst_114 {dimension_numbers = #tpu.dot_dimension_numbers<[1], [0], [0], [1], [0, 0, 1, 1], [], []>} : vector<8x128xf32>, vector<128x128xf32>, vector<8x128xf32> -> vector<8x128xf32>
    %cst_115 = arith.constant dense<0.000000e+00> : vector<128xf32>
    %305 = vector.multi_reduction <add>, %304, %cst_115 [0] : vector<8x128xf32> to vector<128xf32>
    %306 = vector.shape_cast %305 : vector<128xf32> to vector<1x128xf32>
    %cst_116 = arith.constant 1.250000e-01 : f32
    %307 = vector.broadcast %cst_116 : f32 to vector<1x128xf32>
    %308 = arith.mulf %306, %307 : vector<1x128xf32>
    %309 = arith.mulf %304, %304 : vector<8x128xf32>
    %cst_117 = arith.constant dense<0.000000e+00> : vector<128xf32>
    %310 = vector.multi_reduction <add>, %309, %cst_117 [0] : vector<8x128xf32> to vector<128xf32>
    %311 = vector.shape_cast %310 : vector<128xf32> to vector<1x128xf32>
    %cst_118 = arith.constant 1.250000e-01 : f32
    %312 = vector.broadcast %cst_118 : f32 to vector<1x128xf32>
    %313 = arith.mulf %311, %312 : vector<1x128xf32>
    %314 = arith.mulf %308, %308 : vector<1x128xf32>
    %315 = arith.subf %313, %314 : vector<1x128xf32>
    %cst_119 = arith.constant 0.000000e+00 : f32
    %316 = vector.broadcast %cst_119 : f32 to vector<1x128xf32>
    %317 = arith.maximumf %315, %316 : vector<1x128xf32>
    %318 = vector.extract_strided_slice %3 {offsets = [9, 0], sizes = [1, 128], strides = [1, 1]} : vector<16x128xf32> to vector<1x128xf32>
    %cst_120 = arith.constant 9.99999974E-6 : f32
    %319 = vector.broadcast %cst_120 : f32 to vector<1x128xf32>
    %320 = arith.addf %317, %319 : vector<1x128xf32>
    %321 = math.rsqrt %320 : vector<1x128xf32>
    %322 = arith.mulf %318, %321 : vector<1x128xf32>
    %323 = vector.extract_strided_slice %4 {offsets = [9, 0], sizes = [1, 128], strides = [1, 1]} : vector<16x128xf32> to vector<1x128xf32>
    %324 = arith.mulf %308, %322 : vector<1x128xf32>
    %325 = arith.subf %323, %324 : vector<1x128xf32>
    %326 = vector.broadcast %322 : vector<1x128xf32> to vector<8x128xf32>
    %327 = arith.mulf %304, %326 : vector<8x128xf32>
    %328 = vector.broadcast %325 : vector<1x128xf32> to vector<8x128xf32>
    %329 = arith.addf %327, %328 : vector<8x128xf32>
    %cst_121 = arith.constant 0.000000e+00 : f32
    %330 = vector.broadcast %cst_121 : f32 to vector<8x128xf32>
    %331 = arith.maximumf %329, %330 : vector<8x128xf32>
    %cst_122 = arith.constant 0.000000e+00 : f32
    %332 = vector.broadcast %cst_122 : f32 to vector<8x128xf32>
    %333 = arith.select %2, %331, %332 : vector<8x128xi1>, vector<8x128xf32>
    %c10 = arith.constant 10 : index
    %c0_123 = arith.constant 0 : index
    %c0_124 = arith.constant 0 : index
    %334 = vector.load %arg2[%c10, %c0_123, %c0_124] : memref<11x128x128xf32, #tpu.memory_space<vmem>>, vector<1x128x128xf32>
    %335 = vector.shape_cast %334 : vector<1x128x128xf32> to vector<128x128xf32>
    %cst_125 = arith.constant dense<0.000000e+00> : vector<8x128xf32>
    %336 = tpu.matmul %333, %335, %cst_125 {dimension_numbers = #tpu.dot_dimension_numbers<[1], [0], [0], [1], [0, 0, 1, 1], [], []>} : vector<8x128xf32>, vector<128x128xf32>, vector<8x128xf32> -> vector<8x128xf32>
    %cst_126 = arith.constant dense<0.000000e+00> : vector<128xf32>
    %337 = vector.multi_reduction <add>, %336, %cst_126 [0] : vector<8x128xf32> to vector<128xf32>
    %338 = vector.shape_cast %337 : vector<128xf32> to vector<1x128xf32>
    %cst_127 = arith.constant 1.250000e-01 : f32
    %339 = vector.broadcast %cst_127 : f32 to vector<1x128xf32>
    %340 = arith.mulf %338, %339 : vector<1x128xf32>
    %341 = arith.mulf %336, %336 : vector<8x128xf32>
    %cst_128 = arith.constant dense<0.000000e+00> : vector<128xf32>
    %342 = vector.multi_reduction <add>, %341, %cst_128 [0] : vector<8x128xf32> to vector<128xf32>
    %343 = vector.shape_cast %342 : vector<128xf32> to vector<1x128xf32>
    %cst_129 = arith.constant 1.250000e-01 : f32
    %344 = vector.broadcast %cst_129 : f32 to vector<1x128xf32>
    %345 = arith.mulf %343, %344 : vector<1x128xf32>
    %346 = arith.mulf %340, %340 : vector<1x128xf32>
    %347 = arith.subf %345, %346 : vector<1x128xf32>
    %cst_130 = arith.constant 0.000000e+00 : f32
    %348 = vector.broadcast %cst_130 : f32 to vector<1x128xf32>
    %349 = arith.maximumf %347, %348 : vector<1x128xf32>
    %350 = vector.extract_strided_slice %3 {offsets = [10, 0], sizes = [1, 128], strides = [1, 1]} : vector<16x128xf32> to vector<1x128xf32>
    %cst_131 = arith.constant 9.99999974E-6 : f32
    %351 = vector.broadcast %cst_131 : f32 to vector<1x128xf32>
    %352 = arith.addf %349, %351 : vector<1x128xf32>
    %353 = math.rsqrt %352 : vector<1x128xf32>
    %354 = arith.mulf %350, %353 : vector<1x128xf32>
    %355 = vector.extract_strided_slice %4 {offsets = [10, 0], sizes = [1, 128], strides = [1, 1]} : vector<16x128xf32> to vector<1x128xf32>
    %356 = arith.mulf %340, %354 : vector<1x128xf32>
    %357 = arith.subf %355, %356 : vector<1x128xf32>
    %358 = vector.broadcast %354 : vector<1x128xf32> to vector<8x128xf32>
    %359 = arith.mulf %336, %358 : vector<8x128xf32>
    %360 = vector.broadcast %357 : vector<1x128xf32> to vector<8x128xf32>
    %361 = arith.addf %359, %360 : vector<8x128xf32>
    %cst_132 = arith.constant 0.000000e+00 : f32
    %362 = vector.broadcast %cst_132 : f32 to vector<8x128xf32>
    %363 = arith.maximumf %361, %362 : vector<8x128xf32>
    %cst_133 = arith.constant 0.000000e+00 : f32
    %364 = vector.broadcast %cst_133 : f32 to vector<8x128xf32>
    %365 = arith.select %2, %363, %364 : vector<8x128xi1>, vector<8x128xf32>
    %c0_134 = arith.constant 0 : index
    %c0_135 = arith.constant 0 : index
    %366 = vector.load %arg3[%c0_134, %c0_135] : memref<128x640xf32, #tpu.memory_space<vmem>>, vector<128x640xf32>
    %cst_136 = arith.constant dense<0.000000e+00> : vector<8x640xf32>
    %367 = tpu.matmul %365, %366, %cst_136 {dimension_numbers = #tpu.dot_dimension_numbers<[1], [0], [0], [1], [0, 0, 1, 1], [], []>} : vector<8x128xf32>, vector<128x640xf32>, vector<8x640xf32> -> vector<8x640xf32>
    %c0_137 = arith.constant 0 : index
    %c0_138 = arith.constant 0 : index
    %368 = vector.load %arg7[%c0_137, %c0_138] : memref<1x640xf32, #tpu.memory_space<vmem>>, vector<1x640xf32>
    %369 = vector.broadcast %368 : vector<1x640xf32> to vector<8x640xf32>
    %370 = arith.addf %367, %369 : vector<8x640xf32>
    %c0_139 = arith.constant 0 : index
    %c0_140 = arith.constant 0 : index
    %371 = vector.load %arg9[%c0_139, %c0_140] : memref<8x640xf32, #tpu.memory_space<vmem>>, vector<8x640xf32>
    tpu.vector_store %arg9[%c0_139, %c0_140], %370 {strides = array<i32>} : memref<8x640xf32, #tpu.memory_space<vmem>>, vector<8x640xf32>,
    return
  }
}

</mosaic_0001>

<bundles_post_ra>
// kernel: autoencoder_forward.1
= control target key start
LH: loop header
LB: loop body
LE: loop exit
PB: predicated region body
PF: predicated region fallthrough
CT: control target
= control target key end

     0   :  { %15 = vsyncpa [#allocation3], 0  ;;  %s3929_s0 = inlined_call_operand.hbm [shape: f32[8,640], index: 0, kind: input, shape index: {}]   ;;  %s3930_s1 = inlined_call_operand.hbm [shape: f32[640,128], index: 1, kind: input, shape index: {}]   ;;  %s3931_s2 = inlined_call_operand.hbm [shape: f32[11,128,128], index: 2, kind: input, shape index: {}]   ;;  %s3932_s3 = inlined_call_operand.hbm [shape: f32[128,640], index: 3, kind: input, shape index: {}]   ;;  %s3933_s4 = inlined_call_operand.hbm [shape: f32[16,128], index: 4, kind: input, shape index: {}]   ;;  %s3934_s5 = inlined_call_operand.hbm [shape: f32[16,128], index: 5, kind: input, shape index: {}]   ;;  %s3935_s6 = inlined_call_operand.vmem [shape: f32[1,128], index: 6, kind: input, shape index: {}]   ;;  %s3936_s7 = inlined_call_operand.vmem [shape: f32[1,640], index: 7, kind: input, shape index: {}]   ;;  %s3937_s8 = inlined_call_operand.hbm [shape: f32[8,128], index: 8, kind: output, shape index: {0}]   ;;  %s3938_s9 = inlined_call_operand.hbm [shape: f32[8,640], index: 9, kind: output, shape index: {1}]  }
   0x1   :  { %16 = vsyncpa [#allocation6], 0 }
   0x2   :  { %17 = vsyncpa [#allocation9], 0 }
   0x3   :  { %18 = vsyncpa [#allocation12], 0 }
   0x4   :  { %19 = vsyncpa [#allocation4], 0 }
   0x5   :  { %20 = vsyncpa [#allocation15], 0  ;;  %s3535_s30 = smov [#allocation5]   ;;  %s3347_s13 = scalar_lea.hbm %s3930_s1, 10240 }
   0x6   :  { %s36_s10 = sshll.u32 %s3535_s30, 4  ;;  %p3348_p0 = scmp.ne.s32.totalorder %s3930_s1, %s3347_s13  ;;  %s37_s10 = int_to_ptr.vmem [resolvable:$true] %s36_s10 }
   0x7   :  { %p3351_p1 = scmp.lt.u32.totalorder %s3347_s13, %s3930_s1 }
   0x9   :  { %p3353_p2 = pnand %p3351_p1, %p3348_p0 }
   0xb   :  { %3356 = shalt.err (!%p3353_p2)
}
   0xc   :  { %s3357_s18 = scalar_lea.vmem %s37_s10, 10240  ;;  %p3362_p4 = scmp.lt.s32.totalorder %s37_s10, %s37_s10 }
   0xd   :  { %p3358_p3 = scmp.ne.s32.totalorder %s37_s10, %s3357_s18  ;;  %p3363_p5 = scmp.lt.s32.totalorder %s3357_s18, %s3357_s18 }
   0xf   :  { %p3364_p6 = por %p3363_p5, %p3362_p4 }
  0x11   :  { %p3365_p7 = pnand %p3364_p6, %p3358_p3 }
  0x13   :  { %3368 = shalt.err (!%p3365_p7)
}
  0x14   :  { %s3536_s19 = smov 128   ;;  %s3537_s20 = smov 8  }
  0x15   :  { %42 = dma.hbm_to_vmem [thread:$0]  %s3930_s1, 10240, %s37_s10, [#allocation6], %s3536_s19, %s3536_s19, %s3537_s20  }
  0x16   :  { %s3538_s23 = smov [#allocation8]   ;;  %s3369_s27 = scalar_lea.hbm %s3932_s3, 10240 }
  0x17   :  { %s60_s24 = sshll.u32 %s3538_s23, 4  ;;  %p3370_p8 = scmp.ne.s32.totalorder %s3932_s3, %s3369_s27  ;;  %s61_s24 = int_to_ptr.vmem [resolvable:$true] %s60_s24 }
  0x18   :  { %p3373_p9 = scmp.lt.u32.totalorder %s3369_s27, %s3932_s3 }
  0x1a   :  { %p3375_p10 = pnand %p3373_p9, %p3370_p8 }
  0x1c   :  { %3378 = shalt.err (!%p3375_p10)
}
  0x1d   :  { %s3379_s12 = scalar_lea.vmem %s61_s24, 10240  ;;  %p3384_p12 = scmp.lt.s32.totalorder %s61_s24, %s61_s24 }
  0x1e   :  { %p3380_p11 = scmp.ne.s32.totalorder %s61_s24, %s3379_s12  ;;  %p3385_p13 = scmp.lt.s32.totalorder %s3379_s12, %s3379_s12 }
  0x20   :  { %p3386_p0 = por %p3385_p13, %p3384_p12 }
  0x22   :  { %p3387_p1 = pnand %p3386_p0, %p3380_p11 }
  0x24   :  { %3390 = shalt.err (!%p3387_p1)
}
  0x25   :  { %s3539_s1 = smov 640   ;;  %s3540_s10 = smov 40  }
  0x26   :  { %66 = dma.hbm_to_vmem [thread:$0]  %s3932_s3, 10240, %s61_s24, [#allocation9], %s3539_s1, %s3539_s1, %s3540_s10  }
  0x27   :  { %s3541_s15 = smov [#allocation2]   ;;  %s3542_s17 = smov [#allocation7]  }
  0x28   :  { %s27_s16 = sshll.u32 %s3541_s15, 4  ;;  %s48_s18 = sshll.u32 %s3542_s17, 4  ;;  %s28_s16 = int_to_ptr.vmem [resolvable:$true] %s27_s16  ;;  %s3627_s18 = int_to_ptr.vmem [resolvable:$true] %s48_s18 }
  0x29   :  { %s3391_s23 = scalar_lea.hbm %s3929_s0, 640 }
  0x2a   :  { %p3392_p2 = scmp.ne.s32.totalorder %s3929_s0, %s3391_s23  ;;  %p3395_p3 = scmp.lt.u32.totalorder %s3391_s23, %s3929_s0 }
  0x2c   :  { %p3397_p4 = pnand %p3395_p3, %p3392_p2 }
  0x2e   :  { %3400 = shalt.err (!%p3397_p4)
}
  0x2f   :  { %s3401_s3 = scalar_lea.vmem %s28_s16, 640  ;;  %p3406_p6 = scmp.lt.s32.totalorder %s28_s16, %s28_s16 }
  0x30   :  { %p3402_p5 = scmp.ne.s32.totalorder %s28_s16, %s3401_s3  ;;  %p3407_p7 = scmp.lt.s32.totalorder %s3401_s3, %s3401_s3 }
  0x32   :  { %p3408_p8 = por %p3407_p7, %p3406_p6 }
  0x34   :  { %p3409_p9 = pnand %p3408_p8, %p3402_p5 }
  0x36   :  { %3412 = shalt.err (!%p3409_p9)
}
  0x37   :  { %30 = dma.hbm_to_vmem [thread:$0]  %s3929_s0, 640, %s28_s16, [#allocation3]  }
  0x38   :  { %s3413_s12 = scalar_lea.hbm %s3931_s2, 22528 }
  0x39   :  { %p3414_p10 = scmp.ne.s32.totalorder %s3931_s2, %s3413_s12  ;;  %p3417_p11 = scmp.lt.u32.totalorder %s3413_s12, %s3931_s2 }
  0x3b   :  { %p3419_p12 = pnand %p3417_p11, %p3414_p10 }
  0x3d   :  { %3422 = shalt.err (!%p3419_p12)
}
  0x3e   :  { %s3423_s15 = scalar_lea.vmem %s3627_s18, 22528  ;;  %p3428_p0 = scmp.lt.s32.totalorder %s3627_s18, %s3627_s18 }
  0x3f   :  { %p3424_p13 = scmp.ne.s32.totalorder %s3627_s18, %s3423_s15  ;;  %p3429_p1 = scmp.lt.s32.totalorder %s3423_s15, %s3423_s15 }
  0x41   :  { %p3430_p2 = por %p3429_p1, %p3428_p0 }
  0x43   :  { %p3431_p3 = pnand %p3430_p2, %p3424_p13 }
  0x45   :  { %3434 = shalt.err (!%p3431_p3)
}
  0x46   :  { %54 = dma.hbm_to_vmem [thread:$0]  %s3931_s2, 22528, %s3627_s18, [#allocation6], %s3536_s19, %s3536_s19, %s3537_s20  }
  0x47   :  { %s3543_s17 = smov [#allocation10]   ;;  %s3544_s22 = smov [#allocation11]  }
  0x48   :  { %s72_s21 = sshll.u32 %s3543_s17, 4  ;;  %s84_s23 = sshll.u32 %s3544_s22, 4  ;;  %s73_s21 = int_to_ptr.vmem [resolvable:$true] %s72_s21  ;;  %s3661_s23 = int_to_ptr.vmem [resolvable:$true] %s84_s23 }
  0x49   :  { %s3435_s27 = scalar_lea.hbm %s3933_s4, 256 }
  0x4a   :  { %p3436_p4 = scmp.ne.s32.totalorder %s3933_s4, %s3435_s27  ;;  %p3439_p5 = scmp.lt.u32.totalorder %s3435_s27, %s3933_s4 }
  0x4c   :  { %p3441_p6 = pnand %p3439_p5, %p3436_p4 }
  0x4e   :  { %3444 = shalt.err (!%p3441_p6)
}
  0x4f   :  { %s3445_s2 = scalar_lea.vmem %s73_s21, 256  ;;  %p3450_p8 = scmp.lt.s32.totalorder %s73_s21, %s73_s21 }
  0x50   :  { %p3446_p7 = scmp.ne.s32.totalorder %s73_s21, %s3445_s2  ;;  %p3451_p9 = scmp.lt.s32.totalorder %s3445_s2, %s3445_s2 }
  0x52   :  { %p3452_p10 = por %p3451_p9, %p3450_p8 }
  0x54   :  { %p3453_p11 = pnand %p3452_p10, %p3446_p7 }
  0x56   :  { %3456 = shalt.err (!%p3453_p11)
}
  0x57   :  { %78 = dma.hbm_to_vmem [thread:$0]  %s3933_s4, 256, %s73_s21, [#allocation9], %s3536_s19, %s3536_s19, %s3537_s20  }
  0x58   :  { %s3457_s1 = scalar_lea.hbm %s3934_s5, 256 }
  0x59   :  { %p3458_p12 = scmp.ne.s32.totalorder %s3934_s5, %s3457_s1  ;;  %p3461_p13 = scmp.lt.u32.totalorder %s3457_s1, %s3934_s5 }
  0x5b   :  { %p3463_p0 = pnand %p3461_p13, %p3458_p12 }
  0x5d   :  { %3466 = shalt.err (!%p3463_p0)
}
  0x5e   :  { %s3467_s0 = scalar_lea.vmem %s3661_s23, 256  ;;  %p3472_p2 = scmp.lt.s32.totalorder %s3661_s23, %s3661_s23 }
  0x5f   :  { %p3468_p1 = scmp.ne.s32.totalorder %s3661_s23, %s3467_s0  ;;  %p3473_p3 = scmp.lt.s32.totalorder %s3467_s0, %s3467_s0 }
  0x61   :  { %p3474_p4 = por %p3473_p3, %p3472_p2 }
  0x63   :  { %p3475_p5 = pnand %p3474_p4, %p3468_p1 }
  0x65   :  { %3478 = shalt.err (!%p3475_p5)
}
  0x66   :  { %90 = dma.hbm_to_vmem [thread:$0]  %s3934_s5, 256, %s3661_s23, [#allocation12], %s3536_s19, %s3536_s19, %s3537_s20  }
  0x67   :  { %3523 = dma.done.wait [#allocation3], 640  }
  0x68   :  { %3524 = vsyncadd [#allocation3], 4294966656 }
  0x69   :  { %3525 = dma.done.wait [#allocation6], 32768  }
  0x6a   :  { %3526 = vsyncadd [#allocation6], 4294934528 }
  0x6b   :  { %3527 = dma.done.wait [#allocation9], 10496  }
  0x6c   :  { %3528 = vsyncadd [#allocation9], 4294956800 }
  0x6d   :  { %3529 = dma.done.wait [#allocation12], 256  }
  0x6e   :  { %3530 = vsyncadd [#allocation12], 4294967040  ;;  %v141_v0 = vld [vmem:[#allocation5 + $0x80] sm:$0xff]  ;;  %v142_v1 = vld [vmem:[#allocation5 + $0x88] sm:$0xff]  ;;  %vm3546_vm0 = vmmov 0  }
  0x6f   :  { %v173_v2 = vld [vmem:[#allocation5 + $0x180] sm:$0xff]  ;;  %v2868_v3 = vpack.c.bf16 %v142_v1, %v141_v0  ;;  %v174_v4 = vld [vmem:[#allocation5 + $0x188] sm:$0xff]  ;;  %v143_v11 = vld [vmem:[#allocation5 + $0x90] sm:$0xff] }
  0x70   :  { %v125_v5 = vld [vmem:[#allocation5] sm:$0xff]  ;;  %v126_v6 = vld [vmem:[#allocation5 + $0x8] sm:$0xff]  ;;  %v2900_v7 = vpack.c.bf16 %v174_v4, %v173_v2  ;;  %v144_v13 = vld [vmem:[#allocation5 + $0x98] sm:$0xff] }
  0x71   :  { %v2870_v8 = vpack.c.bf16 %v126_v6, %v125_v5  ;;  %v157_v9 = vld [vmem:[#allocation5 + $0x100] sm:$0xff]  ;;  %v158_v10 = vld [vmem:[#allocation5 + $0x108] sm:$0xff]  ;;  %2869 = vmatprep.subr.bf16.mxu0 %v2868_v3  ;;  %v175_v14 = vld [vmem:[#allocation5 + $0x190] sm:$0xff]  ;;  %v2872_v16 = vpack.c.bf16 %v144_v13, %v143_v11 }
  0x72   :  { %v2902_v12 = vpack.c.bf16 %v158_v10, %v157_v9  ;;  %v176_v15 = vld [vmem:[#allocation5 + $0x198] sm:$0xff]  ;;  %2901 = vmatprep.subr.bf16.mxu1 %v2900_v7  ;;  %v127_v18 = vld [vmem:[#allocation5 + $0x10] sm:$0xff]  ;;  %v145_v23 = vld [vmem:[#allocation5 + $0xa0] sm:$0xff] }
  0x73   :  { %2871 = vmatpush3.bf16.msra.mxu0 %v2870_v8  ;;  %v2904_v17 = vpack.c.bf16 %v176_v15, %v175_v14  ;;  %v128_v19 = vld [vmem:[#allocation5 + $0x18] sm:$0xff]  ;;  %v159_v20 = vld [vmem:[#allocation5 + $0x110] sm:$0xff]  ;;  %v146_v24 = vld [vmem:[#allocation5 + $0xa8] sm:$0xff] }
  0x74   :  { %2903 = vmatpush3.bf16.msra.mxu1 %v2902_v12  ;;  %v2874_v21 = vpack.c.bf16 %v128_v19, %v127_v18  ;;  %v160_v22 = vld [vmem:[#allocation5 + $0x118] sm:$0xff]  ;;  %2873 = vmatprep.subr.bf16.mxu0 %v2872_v16  ;;  %v2876_v26 = vpack.c.bf16 %v146_v24, %v145_v23  ;;  %v177_v27 = vld [vmem:[#allocation5 + $0x1a0] sm:$0xff]  ;;  %v178_v28 = vld [vmem:[#allocation5 + $0x1a8] sm:$0xff] }
  0x75   :  { %2905 = vmatprep.subr.bf16.mxu1 %v2904_v17  ;;  %v2906_v25 = vpack.c.bf16 %v160_v22, %v159_v20  ;;  %v129_v29 = vld [vmem:[#allocation5 + $0x20] sm:$0xff]  ;;  %v2908_v30 = vpack.c.bf16 %v178_v28, %v177_v27  ;;  %v130_v31 = vld [vmem:[#allocation5 + $0x28] sm:$0xff]  ;;  %v147_v35 = vld [vmem:[#allocation5 + $0xb0] sm:$0xff] }
  0x76   :  { %v161_v32 = vld [vmem:[#allocation5 + $0x120] sm:$0xff]  ;;  %v162_v33 = vld [vmem:[#allocation5 + $0x128] sm:$0xff]  ;;  %v2878_v34 = vpack.c.bf16 %v130_v31, %v129_v29  ;;  %v148_v36 = vld [vmem:[#allocation5 + $0xb8] sm:$0xff] }
  0x77   :  { %2875 = vmatpush3.bf16.msra.mxu0 %v2874_v21  ;;  %v179_v37 = vld [vmem:[#allocation5 + $0x1b0] sm:$0xff]  ;;  %v2910_v38 = vpack.c.bf16 %v162_v33, %v161_v32  ;;  %v2880_v39 = vpack.c.bf16 %v148_v36, %v147_v35  ;;  %v180_v40 = vld [vmem:[#allocation5 + $0x1b8] sm:$0xff]  ;;  %v149_v46 = vld [vmem:[#allocation5 + $0xc0] sm:$0xff] }
  0x78   :  { %2907 = vmatpush3.bf16.msra.mxu1 %v2906_v25  ;;  %2877 = vmatprep.subr.bf16.mxu0 %v2876_v26  ;;  %v131_v41 = vld [vmem:[#allocation5 + $0x30] sm:$0xff]  ;;  %v132_v42 = vld [vmem:[#allocation5 + $0x38] sm:$0xff]  ;;  %v2912_v43 = vpack.c.bf16 %v180_v40, %v179_v37  ;;  %v150_v47 = vld [vmem:[#allocation5 + $0xc8] sm:$0xff] }
  0x79   :  { %2909 = vmatprep.subr.bf16.mxu1 %v2908_v30  ;;  %v163_v44 = vld [vmem:[#allocation5 + $0x130] sm:$0xff]  ;;  %v164_v45 = vld [vmem:[#allocation5 + $0x138] sm:$0xff]  ;;  %v181_v48 = vld [vmem:[#allocation5 + $0x1c0] sm:$0xff]  ;;  %v2882_v50 = vpack.c.bf16 %v132_v42, %v131_v41  ;;  %v2884_v52 = vpack.c.bf16 %v150_v47, %v149_v46 }
  0x7a   :  { %v182_v49 = vld [vmem:[#allocation5 + $0x1c8] sm:$0xff]  ;;  %v2914_v51 = vpack.c.bf16 %v164_v45, %v163_v44  ;;  %v133_v53 = vld [vmem:[#allocation5 + $0x40] sm:$0xff]  ;;  %v151_v58 = vld [vmem:[#allocation5 + $0xd0] sm:$0xff]  ;;  %v3547_v45 = vmov 0.0  }
  0x7b   :  { %2879 = vmatpush3.bf16.msra.mxu0 %v2878_v34  ;;  %v134_v54 = vld [vmem:[#allocation5 + $0x48] sm:$0xff]  ;;  %v165_v55 = vld [vmem:[#allocation5 + $0x140] sm:$0xff]  ;;  %v2916_v56 = vpack.c.bf16 %v182_v49, %v181_v48  ;;  %v152_v59 = vld [vmem:[#allocation5 + $0xd8] sm:$0xff] }
  0x7c   :  { %2911 = vmatpush3.bf16.msra.mxu1 %v2910_v38  ;;  %2881 = vmatprep.subr.bf16.mxu0 %v2880_v39  ;;  %v166_v57 = vld [vmem:[#allocation5 + $0x148] sm:$0xff]  ;;  %v183_v60 = vld [vmem:[#allocation5 + $0x1d0] sm:$0xff]  ;;  %v184_v61 = vld [vmem:[#allocation5 + $0x1d8] sm:$0xff]  ;;  %v2886_v62 = vpack.c.bf16 %v134_v54, %v133_v53  ;;  %v2888_v0 = vpack.c.bf16 %v152_v59, %v151_v58  ;;  %v3545_v39 = vmov 0.0|0.0  }
  0x7d   :  { %2913 = vmatprep.subr.bf16.mxu1 %v2912_v43  ;;  %v2918_v63 = vpack.c.bf16 %v166_v57, %v165_v55  ;;  %v135_v1 = vld [vmem:[#allocation5 + $0x50] sm:$0xff]  ;;  %v136_v2 = vld [vmem:[#allocation5 + $0x58] sm:$0xff]  ;;  %v2920_v4 = vpack.c.bf16 %v184_v61, %v183_v60  ;;  %v153_v6 = vld [vmem:[#allocation5 + $0xe0] sm:$0xff] }
  0x7e   :  { %v167_v3 = vld [vmem:[#allocation5 + $0x150] sm:$0xff]  ;;  %v168_v5 = vld [vmem:[#allocation5 + $0x158] sm:$0xff]  ;;  %v154_v7 = vld [vmem:[#allocation5 + $0xe8] sm:$0xff]  ;;  %v2890_v10 = vpack.c.bf16 %v136_v2, %v135_v1 }
  0x7f   :  { %2883 = vmatpush3.bf16.msra.mxu0 %v2882_v50  ;;  %v185_v8 = vld [vmem:[#allocation5 + $0x1e0] sm:$0xff]  ;;  %v186_v9 = vld [vmem:[#allocation5 + $0x1e8] sm:$0xff]  ;;  %v2922_v13 = vpack.c.bf16 %v168_v5, %v167_v3  ;;  %v2892_v14 = vpack.c.bf16 %v154_v7, %v153_v6  ;;  %v123_v17 = vld [vmem:[#allocation2 + $0x18] sm:$0xff] }
  0x80   :  { %2915 = vmatpush3.bf16.msra.mxu1 %v2914_v51  ;;  %2885 = vmatprep.subr.bf16.mxu0 %v2884_v52  ;;  %v137_v11 = vld [vmem:[#allocation5 + $0x60] sm:$0xff]  ;;  %v138_v12 = vld [vmem:[#allocation5 + $0x68] sm:$0xff]  ;;  %v2924_v18 = vpack.c.bf16 %v186_v9, %v185_v8  ;;  %v155_v20 = vld [vmem:[#allocation5 + $0xf0] sm:$0xff] }
  0x81   :  { %2917 = vmatprep.subr.bf16.mxu1 %v2916_v56  ;;  %v169_v15 = vld [vmem:[#allocation5 + $0x160] sm:$0xff]  ;;  %v170_v19 = vld [vmem:[#allocation5 + $0x168] sm:$0xff]  ;;  %v156_v21 = vld [vmem:[#allocation5 + $0xf8] sm:$0xff]  ;;  %339 = vmatprep.mubr.f32.mxu1 %v123_v17  ;;  %v2894_v24 = vpack.c.bf16 %v138_v12, %v137_v11 }
  0x82   :  { %v121_v16 = vld [vmem:[#allocation2 + $0x8] sm:$0xff]  ;;  %v187_v22 = vld [vmem:[#allocation5 + $0x1f0] sm:$0xff]  ;;  %v188_v23 = vld [vmem:[#allocation5 + $0x1f8] sm:$0xff]  ;;  %v2926_v25 = vpack.c.bf16 %v170_v19, %v169_v15  ;;  %v2896_v26 = vpack.c.bf16 %v156_v21, %v155_v20 }
  0x83   :  { %2887 = vmatpush3.bf16.msra.mxu0 %v2886_v62  ;;  %269 = vmatprep.mubr.f32.mxu0 %v121_v16  ;;  %v139_v27 = vld [vmem:[#allocation5 + $0x70] sm:$0xff]  ;;  %v140_v28 = vld [vmem:[#allocation5 + $0x78] sm:$0xff]  ;;  %v2928_v29 = vpack.c.bf16 %v188_v23, %v187_v22  ;;  %v189_v34 = vld [vmem:[#allocation5 + $0x200] sm:$0xff] }
  0x84   :  { %2919 = vmatpush3.bf16.msra.mxu1 %v2918_v63  ;;  %2889 = vmatprep.subr.bf16.mxu0 %v2888_v0  ;;  %v171_v30 = vld [vmem:[#allocation5 + $0x170] sm:$0xff]  ;;  %v172_v31 = vld [vmem:[#allocation5 + $0x178] sm:$0xff]  ;;  %v2898_v32 = vpack.c.bf16 %v140_v28, %v139_v27  ;;  %v190_v35 = vld [vmem:[#allocation5 + $0x208] sm:$0xff] }
  0x85   :  { %2921 = vmatprep.subr.bf16.mxu1 %v2920_v4  ;;  %v2930_v33 = vpack.c.bf16 %v172_v31, %v171_v30  ;;  %v120_v36 = vld [vmem:[#allocation2] sm:$0xff]  ;;  %v2933_v37 = vpack.c.bf16 %v190_v35, %v189_v34  ;;  %v122_v38 = vld [vmem:[#allocation2 + $0x10] sm:$0xff]  ;;  %v191_v40 = vld [vmem:[#allocation5 + $0x210] sm:$0xff] }
  0x86   :  { %v192_v41 = vld [vmem:[#allocation5 + $0x218] sm:$0xff]  ;;  %v193_v43 = vld [vmem:[#allocation5 + $0x220] sm:$0xff]  ;;  %v194_v44 = vld [vmem:[#allocation5 + $0x228] sm:$0xff] }
  0x87   :  { %2891 = vmatpush3.bf16.msra.mxu0 %v2890_v10  ;;  %v2936_v42 = vpack.c.bf16 %v192_v41, %v191_v40  ;;  %v2939_v46 = vpack.c.bf16 %v194_v44, %v193_v43  ;;  %v195_v47 = vld [vmem:[#allocation5 + $0x230] sm:$0xff]  ;;  %v196_v48 = vld [vmem:[#allocation5 + $0x238] sm:$0xff]  ;;  %v197_v50 = vld [vmem:[#allocation5 + $0x240] sm:$0xff] }
  0x88   :  { %2923 = vmatpush3.bf16.msra.mxu1 %v2922_v13  ;;  %2893 = vmatprep.subr.bf16.mxu0 %v2892_v14  ;;  %v2942_v49 = vpack.c.bf16 %v196_v48, %v195_v47  ;;  %v198_v51 = vld [vmem:[#allocation5 + $0x248] sm:$0xff]  ;;  %v199_v53 = vld [vmem:[#allocation5 + $0x250] sm:$0xff]  ;;  %v200_v54 = vld [vmem:[#allocation5 + $0x258] sm:$0xff] }
  0x89   :  { %2925 = vmatprep.subr.bf16.mxu1 %v2924_v18  ;;  %v2945_v52 = vpack.c.bf16 %v198_v51, %v197_v50  ;;  %v2948_v55 = vpack.c.bf16 %v200_v54, %v199_v53  ;;  %v201_v56 = vld [vmem:[#allocation5 + $0x260] sm:$0xff]  ;;  %v202_v57 = vld [vmem:[#allocation5 + $0x268] sm:$0xff]  ;;  %v203_v59 = vld [vmem:[#allocation5 + $0x270] sm:$0xff]  ;;  %v438_v54 = vlaneseq }
  0x8a   :  { %v2951_v58 = vpack.c.bf16 %v202_v57, %v201_v56  ;;  %v204_v60 = vld [vmem:[#allocation5 + $0x278] sm:$0xff]  ;;  %v450_v63 = vld [vmem:[#allocation7] sm:$0xff]  ;;  %v451_v0 = vld [vmem:[#allocation7 + $0x8] sm:$0xff] }
  0x8b   :  { %2895 = vmatpush3.bf16.msra.mxu0 %v2894_v24  ;;  %v2954_v61 = vpack.c.bf16 %v204_v60, %v203_v59  ;;  %v124_v62 = vld [vmem:[#allocation2 + $0x20] sm:$0xff]  ;;  %v2957_v1 = vpack.c.bf16 %v451_v0, %v450_v63  ;;  %v452_v2 = vld [vmem:[#allocation7 + $0x10] sm:$0xff]  ;;  %v454_v5 = vld [vmem:[#allocation7 + $0x20] sm:$0xff] }
  0x8c   :  { %2927 = vmatpush3.bf16.msra.mxu1 %v2926_v25  ;;  %2897 = vmatprep.subr.bf16.mxu0 %v2896_v26  ;;  %v453_v3 = vld [vmem:[#allocation7 + $0x18] sm:$0xff]  ;;  %v455_v6 = vld [vmem:[#allocation7 + $0x28] sm:$0xff]  ;;  %v456_v8 = vld [vmem:[#allocation7 + $0x30] sm:$0xff] }
  0x8d   :  { %2929 = vmatprep.subr.bf16.mxu1 %v2928_v29  ;;  %v2960_v4 = vpack.c.bf16 %v453_v3, %v452_v2  ;;  %v2963_v7 = vpack.c.bf16 %v455_v6, %v454_v5  ;;  %v457_v9 = vld [vmem:[#allocation7 + $0x38] sm:$0xff]  ;;  %v458_v11 = vld [vmem:[#allocation7 + $0x40] sm:$0xff]  ;;  %v459_v12 = vld [vmem:[#allocation7 + $0x48] sm:$0xff] }
  0x8e   :  { %v2966_v10 = vpack.c.bf16 %v457_v9, %v456_v8  ;;  %v2969_v13 = vpack.c.bf16 %v459_v12, %v458_v11  ;;  %v460_v14 = vld [vmem:[#allocation7 + $0x50] sm:$0xff]  ;;  %v461_v15 = vld [vmem:[#allocation7 + $0x58] sm:$0xff]  ;;  %v462_v17 = vld [vmem:[#allocation7 + $0x60] sm:$0xff] }
  0x8f   :  { %2899 = vmatpush3.bf16.msra.mxu0 %v2898_v32  ;;  %v2972_v16 = vpack.c.bf16 %v461_v15, %v460_v14  ;;  %v463_v18 = vld [vmem:[#allocation7 + $0x68] sm:$0xff]  ;;  %v464_v20 = vld [vmem:[#allocation7 + $0x70] sm:$0xff]  ;;  %v465_v21 = vld [vmem:[#allocation7 + $0x78] sm:$0xff] }
  0x90   :  { %2931 = vmatpush3.bf16.msra.mxu1 %v2930_v33  ;;  %2932 = vmatprep.subr.bf16.mxu0 %v3545_v39  ;;  %v2975_v19 = vpack.c.bf16 %v463_v18, %v462_v17  ;;  %v2978_v22 = vpack.c.bf16 %v465_v21, %v464_v20  ;;  %v3724_v56 = vld [vmem:[#allocation10] sm:$0xff]  ;;  %v3730_v60 = vld [vmem:[#allocation11] sm:$0xff]  ;;  %v573_v5 = vld [vmem:[#allocation7 + $0x88] sm:$0xff] }
  0x91   :  { %2956 = vmatprep.subr.bf16.mxu1 %v3545_v39  ;;  %v575_v8 = vld [vmem:[#allocation7 + $0x98] sm:$0xff]  ;;  %v577_v11 = vld [vmem:[#allocation7 + $0xa8] sm:$0xff] }
  0x92   :  { %270 = vmatmul.mubr.f32.vlgmr.msra.gmra.mrb[0].mxu0 %v120_v36  ;;  %v579_v14 = vld [vmem:[#allocation7 + $0xb8] sm:$0xff]  ;;  %v581_v17 = vld [vmem:[#allocation7 + $0xc8] sm:$0xff] }
  0x93   :  { %340 = vmatmul.mubr.f32.vlgmr.msra.gmra.mrb[0].mxu1 %v122_v38  ;;  %2934 = vmatpush3.bf16.msra.mxu0 %v2933_v37  ;;  %v583_v20 = vld [vmem:[#allocation7 + $0xd8] sm:$0xff] }
  0x94   :  { %2935 = vmatprep.subr.bf16.mxu0 %v3545_v39  ;;  %2445 = vmatprep.mubr.msk.f32.mxu0 %vm3546_vm0, %v3547_v45 }
  0x95   :  { %2480 = vmatprep.mubr.msk.f32.mxu1 %vm3546_vm0, %v3547_v45  ;;  %2958 = vmatpush3.bf16.msra.mxu1 %v2957_v1 }
  0x96   :  { %2959 = vmatprep.subr.bf16.mxu1 %v3545_v39 }
  0x97   :  { %2937 = vmatpush3.bf16.msra.mxu0 %v2936_v42 }
  0x98   :  { %2938 = vmatprep.subr.bf16.mxu0 %v3545_v39 }
  0x99   :  { %2961 = vmatpush3.bf16.msra.mxu1 %v2960_v4  ;;  %v572_v4 = vld [vmem:[#allocation7 + $0x80] sm:$0xff] }
  0x9a   :  { %2962 = vmatprep.subr.bf16.mxu1 %v3545_v39  ;;  %v2981_v6 = vpack.c.bf16 %v573_v5, %v572_v4  ;;  %v696_v4 = vld [vmem:[#allocation7 + $0x110] sm:$0xff]  ;;  %v697_v5 = vld [vmem:[#allocation7 + $0x118] sm:$0xff] }
  0x9b   :  { %2940 = vmatpush3.bf16.msra.mxu0 %v2939_v46 }
  0x9c   :  { %2941 = vmatprep.subr.bf16.mxu0 %v3545_v39 }
  0x9d   :  { %2964 = vmatpush3.bf16.msra.mxu1 %v2963_v7  ;;  %v574_v7 = vld [vmem:[#allocation7 + $0x90] sm:$0xff] }
  0x9e   :  { %2965 = vmatprep.subr.bf16.mxu1 %v3545_v39  ;;  %v2984_v9 = vpack.c.bf16 %v575_v8, %v574_v7  ;;  %v698_v7 = vld [vmem:[#allocation7 + $0x120] sm:$0xff]  ;;  %v699_v8 = vld [vmem:[#allocation7 + $0x128] sm:$0xff] }
  0x9f   :  { %2943 = vmatpush3.bf16.msra.mxu0 %v2942_v49 }
  0xa0   :  { %2944 = vmatprep.subr.bf16.mxu0 %v3545_v39 }
  0xa1   :  { %2967 = vmatpush3.bf16.msra.mxu1 %v2966_v10  ;;  %v576_v10 = vld [vmem:[#allocation7 + $0xa0] sm:$0xff] }
  0xa2   :  { %2968 = vmatprep.subr.bf16.mxu1 %v3545_v39  ;;  %v2987_v12 = vpack.c.bf16 %v577_v11, %v576_v10  ;;  %v700_v10 = vld [vmem:[#allocation7 + $0x130] sm:$0xff]  ;;  %v701_v11 = vld [vmem:[#allocation7 + $0x138] sm:$0xff] }
  0xa3   :  { %2946 = vmatpush3.bf16.msra.mxu0 %v2945_v52 }
  0xa4   :  { %2947 = vmatprep.subr.bf16.mxu0 %v3545_v39 }
  0xa5   :  { %2970 = vmatpush3.bf16.msra.mxu1 %v2969_v13  ;;  %v578_v13 = vld [vmem:[#allocation7 + $0xb0] sm:$0xff] }
  0xa6   :  { %2971 = vmatprep.subr.bf16.mxu1 %v3545_v39  ;;  %v2990_v15 = vpack.c.bf16 %v579_v14, %v578_v13  ;;  %v702_v13 = vld [vmem:[#allocation7 + $0x140] sm:$0xff]  ;;  %v703_v14 = vld [vmem:[#allocation7 + $0x148] sm:$0xff] }
  0xa7   :  { %2949 = vmatpush3.bf16.msra.mxu0 %v2948_v55  ;;  %v3722_v55 = vshrl.u32 %v438_v54, 7 }
  0xa8   :  { %2950 = vmatprep.subr.bf16.mxu0 %v3545_v39 }
  0xa9   :  { %2973 = vmatpush3.bf16.msra.mxu1 %v2972_v16  ;;  %v3727_v57 = vsub.s32 0, %v3722_v55  ;;  %v580_v16 = vld [vmem:[#allocation7 + $0xc0] sm:$0xff] }
  0xaa   :  { %2974 = vmatprep.subr.bf16.mxu1 %v3545_v39  ;;  %v2993_v18 = vpack.c.bf16 %v581_v17, %v580_v16  ;;  %v704_v16 = vld [vmem:[#allocation7 + $0x150] sm:$0xff]  ;;  %v705_v17 = vld [vmem:[#allocation7 + $0x158] sm:$0xff] }
  0xab   :  { %2952 = vmatpush3.bf16.msra.mxu0 %v2951_v58 }
  0xac   :  { %2953 = vmatprep.subr.bf16.mxu0 %v3545_v39 }
  0xad   :  { %2976 = vmatpush3.bf16.msra.mxu1 %v2975_v19  ;;  %v582_v19 = vld [vmem:[#allocation7 + $0xd0] sm:$0xff] }
  0xae   :  { %2977 = vmatprep.subr.bf16.mxu1 %v3545_v39  ;;  %v2996_v21 = vpack.c.bf16 %v583_v20, %v582_v19  ;;  %v706_v19 = vld [vmem:[#allocation7 + $0x160] sm:$0xff]  ;;  %v707_v20 = vld [vmem:[#allocation7 + $0x168] sm:$0xff] }
  0xaf   :  { %2955 = vmatpush3.bf16.msra.mxu0 %v2954_v61 }
  0xb0   :  { %2980 = vmatprep.subr.bf16.mxu0 %v3545_v39 }
  0xb1   :  { %2979 = vmatpush3.bf16.msra.mxu1 %v2978_v22  ;;  %v584_v22 = vld [vmem:[#allocation7 + $0xe0] sm:$0xff] }
  0xb2   :  { %2446 = vmatmul.mubr.f32.vlgmr.msra.gmra.mrb[2].mxu0 %v124_v62  ;;  %3004 = vmatprep.subr.bf16.mxu1 %v3545_v39 }
  0xb3   :  { %2515 = vmatprep.mubr.msk.f32.mxu0 %vm3546_vm0, %v3547_v45  ;;  %2982 = vmatpush3.bf16.msra.mxu0 %v2981_v6  ;;  %v3008_v6 = vpack.c.bf16 %v697_v5, %v696_v4  ;;  %v820_v5 = vld [vmem:[#allocation7 + $0x1a0] sm:$0xff] }
  0xb4   :  { %2983 = vmatprep.subr.bf16.mxu0 %v3545_v39 }
  0xb7   :  { %2985 = vmatpush3.bf16.msra.mxu0 %v2984_v9  ;;  %v3011_v9 = vpack.c.bf16 %v699_v8, %v698_v7  ;;  %v822_v8 = vld [vmem:[#allocation7 + $0x1b0] sm:$0xff] }
  0xb8   :  { %2986 = vmatprep.subr.bf16.mxu0 %v3545_v39 }
  0xbb   :  { %2988 = vmatpush3.bf16.msra.mxu0 %v2987_v12  ;;  %v3014_v12 = vpack.c.bf16 %v701_v11, %v700_v10  ;;  %v824_v11 = vld [vmem:[#allocation7 + $0x1c0] sm:$0xff] }
  0xbc   :  { %2989 = vmatprep.subr.bf16.mxu0 %v3545_v39 }
  0xbf   :  { %2991 = vmatpush3.bf16.msra.mxu0 %v2990_v15  ;;  %v3017_v15 = vpack.c.bf16 %v703_v14, %v702_v13  ;;  %v826_v14 = vld [vmem:[#allocation7 + $0x1d0] sm:$0xff] }
  0xc0   :  { %2992 = vmatprep.subr.bf16.mxu0 %v3545_v39 }
  0xc3   :  { %2994 = vmatpush3.bf16.msra.mxu0 %v2993_v18  ;;  %v3020_v18 = vpack.c.bf16 %v705_v17, %v704_v16  ;;  %v828_v17 = vld [vmem:[#allocation7 + $0x1e0] sm:$0xff] }
  0xc4   :  { %2995 = vmatprep.subr.bf16.mxu0 %v3545_v39 }
  0xc7   :  { %2997 = vmatpush3.bf16.msra.mxu0 %v2996_v21  ;;  %v3023_v21 = vpack.c.bf16 %v707_v20, %v706_v19  ;;  %v830_v20 = vld [vmem:[#allocation7 + $0x1f0] sm:$0xff] }
  0xc8   :  { %2998 = vmatprep.subr.bf16.mxu0 %v3545_v39 }
 0x165   :  { %v2154_v23 = vpop.f32.mrb[0].mxu0 }
 0x166   :  { %v2189_v24 = vpop.f32.mrb[0].mxu1  ;;  %v2155_v25 = vpop.f32.mrb[1].mxu0 }
 0x167   :  { %v2156_v26 = vadd.f32 %v2155_v25, %v2154_v23  ;;  %v2190_v27 = vpop.f32.mrb[1].mxu1  ;;  %v585_v23 = vld [vmem:[#allocation7 + $0xe8] sm:$0xff]  ;;  %v586_v25 = vld [vmem:[#allocation7 + $0xf0] sm:$0xff] }
 0x168   :  { %v2191_v28 = vadd.f32 %v2190_v27, %v2189_v24  ;;  %v2999_v24 = vpack.c.bf16 %v585_v23, %v584_v22  ;;  %v708_v22 = vld [vmem:[#allocation7 + $0x170] sm:$0xff]  ;;  %v709_v23 = vld [vmem:[#allocation7 + $0x178] sm:$0xff] }
 0x16a   :  { %v342_v29 = vadd.f32 %v2191_v28, %v2156_v26  ;;  %3000 = vmatpush3.bf16.msra.mxu0 %v2999_v24  ;;  %v587_v26 = vld [vmem:[#allocation7 + $0xf8] sm:$0xff]  ;;  %v3026_v24 = vpack.c.bf16 %v709_v23, %v708_v22 }
 0x16b   :  { %3001 = vmatprep.subr.bf16.mxu0 %v3545_v39  ;;  %v3002_v27 = vpack.c.bf16 %v587_v26, %v586_v25 }
 0x16e   :  { %3003 = vmatpush3.bf16.msra.mxu0 %v3002_v27 }
 0x16f   :  { %3028 = vmatprep.subr.bf16.mxu0 %v3545_v39 }
 0x185   :  { %v411_v30 = vpop.f32.mrb[2].mxu0 }
 0x186   :  { %v412_v31 = vadd.f32 %v411_v30, %v342_v29  ;;  %v2447_v32 = vpop.f32.mrb[3].mxu0 }
 0x188   :  { %v415_v33 = vrot.slane %v412_v31, 4  ;;  %v422_v34 = vmul.f32 %v412_v31, %v412_v31 }
 0x18a   :  { %v416_v35 = vadd.f32 %v415_v33, %v412_v31  ;;  %v423_v36 = vrot.slane %v422_v34, 4 }
 0x18c   :  { %v417_v37 = vrot.slane %v416_v35, 2  ;;  %v424_v38 = vadd.f32 %v423_v36, %v422_v34 }
 0x18e   :  { %v418_v40 = vadd.f32 %v417_v37, %v416_v35  ;;  %v425_v41 = vrot.slane %v424_v38, 2 }
 0x190   :  { %v419_v42 = vrot.slane %v418_v40, 1  ;;  %v426_v43 = vadd.f32 %v425_v41, %v424_v38 }
 0x192   :  { %v420_v44 = vadd.f32 %v419_v42, %v418_v40  ;;  %v427_v46 = vrot.slane %v426_v43, 1 }
 0x194   :  { %v421_v47 = vmul.f32 0.125, %v420_v44  ;;  %v428_v48 = vadd.f32 %v427_v46, %v426_v43 }
 0x196   :  { %v429_v49 = vmul.f32 0.125, %v428_v48  ;;  %v430_v50 = vmul.f32 %v421_v47, %v421_v47 }
 0x198   :  { %v431_v51 = vsub.f32 %v429_v49, %v430_v50 }
 0x19a   :  { %v432_v52 = vmax.f32 %v431_v51, 0.0  ;;  %v3746_v51 = vsub.s32 1, %v3722_v55 }
 0x19c   :  { %v433_v53 = vadd.f32 1e-05, %v432_v52 }
 0x19e   :  { %3323 = vrsqrt.f32 %v433_v53 }
 0x1a8   :  { %v3324_v58 = vpop.eup %3323 }
 0x1a9   :  { %v435_v59 = vmul.f32 %v3324_v58, %v3724_v56 }
 0x1ab   :  { %v441_v61 = vrot.slane %v435_v59, %v3727_v57  ;;  %v436_v62 = vmul.f32 %v435_v59, %v421_v47 }
 0x1ad   :  { %v437_v63 = vsub.f32 %v3730_v60, %v436_v62  ;;  %v442_v0 = vmul.f32 %v441_v61, %v412_v31 }
 0x1af   :  { %v446_v1 = vrot.slane %v437_v63, %v3727_v57 }
 0x1b1   :  { %v447_v2 = vadd.f32 %v446_v1, %v442_v0  ;;  %v694_v1 = vld [vmem:[#allocation7 + $0x100] sm:$0xff] }
 0x1b3   :  { %v448_v3 = vmax.f32 %v447_v2, 0.0  ;;  %v695_v2 = vld [vmem:[#allocation7 + $0x108] sm:$0xff] }
 0x1b5   :  { %2481 = vmatmul.mubr.f32.vlgmr.msra.gmra.mrb[2].mxu1 %v448_v3  ;;  %v3005_v3 = vpack.c.bf16 %v695_v2, %v694_v1  ;;  %v818_v2 = vld [vmem:[#allocation7 + $0x190] sm:$0xff] }
 0x1b6   :  { %2550 = vmatprep.mubr.msk.f32.mxu1 %vm3546_vm0, %v3547_v45 }
 0x1b7   :  { %3006 = vmatpush3.bf16.msra.mxu1 %v3005_v3  ;;  %v819_v3 = vld [vmem:[#allocation7 + $0x198] sm:$0xff] }
 0x1b8   :  { %3007 = vmatprep.subr.bf16.mxu1 %v3545_v39  ;;  %v3032_v4 = vpack.c.bf16 %v819_v3, %v818_v2  ;;  %v941_v2 = vld [vmem:[#allocation7 + $0x218] sm:$0xff] }
 0x1bb   :  { %3009 = vmatpush3.bf16.msra.mxu1 %v3008_v6  ;;  %v821_v6 = vld [vmem:[#allocation7 + $0x1a8] sm:$0xff] }
 0x1bc   :  { %3010 = vmatprep.subr.bf16.mxu1 %v3545_v39  ;;  %v3035_v7 = vpack.c.bf16 %v821_v6, %v820_v5  ;;  %v943_v5 = vld [vmem:[#allocation7 + $0x228] sm:$0xff] }
 0x1bf   :  { %3012 = vmatpush3.bf16.msra.mxu1 %v3011_v9  ;;  %v823_v9 = vld [vmem:[#allocation7 + $0x1b8] sm:$0xff] }
 0x1c0   :  { %3013 = vmatprep.subr.bf16.mxu1 %v3545_v39  ;;  %v3038_v10 = vpack.c.bf16 %v823_v9, %v822_v8  ;;  %v945_v8 = vld [vmem:[#allocation7 + $0x238] sm:$0xff] }
 0x1c3   :  { %3015 = vmatpush3.bf16.msra.mxu1 %v3014_v12  ;;  %v825_v12 = vld [vmem:[#allocation7 + $0x1c8] sm:$0xff] }
 0x1c4   :  { %3016 = vmatprep.subr.bf16.mxu1 %v3545_v39  ;;  %v3041_v13 = vpack.c.bf16 %v825_v12, %v824_v11  ;;  %v947_v11 = vld [vmem:[#allocation7 + $0x248] sm:$0xff] }
 0x1c7   :  { %3018 = vmatpush3.bf16.msra.mxu1 %v3017_v15  ;;  %v827_v15 = vld [vmem:[#allocation7 + $0x1d8] sm:$0xff] }
 0x1c8   :  { %3019 = vmatprep.subr.bf16.mxu1 %v3545_v39  ;;  %v3044_v16 = vpack.c.bf16 %v827_v15, %v826_v14  ;;  %v949_v14 = vld [vmem:[#allocation7 + $0x258] sm:$0xff] }
 0x1cb   :  { %3021 = vmatpush3.bf16.msra.mxu1 %v3020_v18  ;;  %v829_v18 = vld [vmem:[#allocation7 + $0x1e8] sm:$0xff] }
 0x1cc   :  { %3022 = vmatprep.subr.bf16.mxu1 %v3545_v39  ;;  %v3047_v19 = vpack.c.bf16 %v829_v18, %v828_v17  ;;  %v951_v17 = vld [vmem:[#allocation7 + $0x268] sm:$0xff] }
 0x1cf   :  { %3024 = vmatpush3.bf16.msra.mxu1 %v3023_v21  ;;  %v831_v21 = vld [vmem:[#allocation7 + $0x1f8] sm:$0xff] }
 0x1d0   :  { %3025 = vmatprep.subr.bf16.mxu1 %v3545_v39  ;;  %v3050_v22 = vpack.c.bf16 %v831_v21, %v830_v20  ;;  %v953_v20 = vld [vmem:[#allocation7 + $0x278] sm:$0xff] }
 0x1d3   :  { %3027 = vmatpush3.bf16.msra.mxu1 %v3026_v24 }
 0x1d4   :  { %3052 = vmatprep.subr.bf16.mxu1 %v3545_v39 }
 0x288   :  { %v532_v28 = vpop.f32.mrb[2].mxu1 }
 0x289   :  { %v536_v29 = vrot.slane %v532_v28, 4  ;;  %v543_v30 = vmul.f32 %v532_v28, %v532_v28  ;;  %v2482_v31 = vpop.f32.mrb[3].mxu1 }
 0x28b   :  { %v537_v32 = vadd.f32 %v536_v29, %v532_v28  ;;  %v544_v33 = vrot.slane %v543_v30, 4 }
 0x28d   :  { %v538_v34 = vrot.slane %v537_v32, 2  ;;  %v545_v35 = vadd.f32 %v544_v33, %v543_v30 }
 0x28f   :  { %v539_v36 = vadd.f32 %v538_v34, %v537_v32  ;;  %v546_v37 = vrot.slane %v545_v35, 2 }
 0x291   :  { %v540_v38 = vrot.slane %v539_v36, 1  ;;  %v547_v40 = vadd.f32 %v546_v37, %v545_v35 }
 0x293   :  { %v541_v41 = vadd.f32 %v540_v38, %v539_v36  ;;  %v548_v42 = vrot.slane %v547_v40, 1 }
 0x295   :  { %v542_v43 = vmul.f32 0.125, %v541_v41  ;;  %v549_v44 = vadd.f32 %v548_v42, %v547_v40 }
 0x297   :  { %v550_v46 = vmul.f32 0.125, %v549_v44  ;;  %v551_v47 = vmul.f32 %v542_v43, %v542_v43 }
 0x299   :  { %v552_v48 = vsub.f32 %v550_v46, %v551_v47 }
 0x29b   :  { %v553_v49 = vmax.f32 %v552_v48, 0.0  ;;  %v3763_v48 = vsub.s32 2, %v3722_v55 }
 0x29d   :  { %v554_v50 = vadd.f32 1e-05, %v553_v49 }
 0x29f   :  { %3325 = vrsqrt.f32 %v554_v50 }
 0x2a9   :  { %v3326_v52 = vpop.eup %3325 }
 0x2aa   :  { %v556_v53 = vmul.f32 %v3326_v52, %v3724_v56 }
 0x2ac   :  { %v557_v54 = vmul.f32 %v556_v53, %v542_v43  ;;  %v562_v58 = vrot.slane %v556_v53, %v3746_v51 }
 0x2ae   :  { %v558_v59 = vsub.f32 %v3730_v60, %v557_v54  ;;  %v563_v61 = vmul.f32 %v562_v58, %v532_v28 }
 0x2b0   :  { %v567_v62 = vrot.slane %v558_v59, %v3746_v51 }
 0x2b2   :  { %v568_v63 = vadd.f32 %v567_v62, %v563_v61 }
 0x2b4   :  { %v569_v0 = vmax.f32 %v568_v63, 0.0  ;;  %v816_v63 = vld [vmem:[#allocation7 + $0x180] sm:$0xff] }
 0x2b6   :  { %2516 = vmatmul.mubr.f32.vlgmr.msra.gmra.mrb[4].mxu0 %v569_v0  ;;  %v817_v0 = vld [vmem:[#allocation7 + $0x188] sm:$0xff] }
 0x2b7   :  { %2585 = vmatprep.mubr.msk.f32.mxu0 %vm3546_vm0, %v3547_v45  ;;  %v3029_v1 = vpack.c.bf16 %v817_v0, %v816_v63  ;;  %v939_v63 = vld [vmem:[#allocation7 + $0x208] sm:$0xff] }
 0x2b9   :  { %3030 = vmatpush3.bf16.msra.mxu0 %v3029_v1  ;;  %v940_v1 = vld [vmem:[#allocation7 + $0x210] sm:$0xff] }
 0x2ba   :  { %3031 = vmatprep.subr.bf16.mxu0 %v3545_v39  ;;  %v3056_v3 = vpack.c.bf16 %v941_v2, %v940_v1 }
 0x2bd   :  { %3033 = vmatpush3.bf16.msra.mxu0 %v3032_v4  ;;  %v942_v4 = vld [vmem:[#allocation7 + $0x220] sm:$0xff] }
 0x2be   :  { %3034 = vmatprep.subr.bf16.mxu0 %v3545_v39  ;;  %v3059_v6 = vpack.c.bf16 %v943_v5, %v942_v4 }
 0x2c1   :  { %3036 = vmatpush3.bf16.msra.mxu0 %v3035_v7  ;;  %v944_v7 = vld [vmem:[#allocation7 + $0x230] sm:$0xff] }
 0x2c2   :  { %3037 = vmatprep.subr.bf16.mxu0 %v3545_v39  ;;  %v3062_v9 = vpack.c.bf16 %v945_v8, %v944_v7 }
 0x2c5   :  { %3039 = vmatpush3.bf16.msra.mxu0 %v3038_v10  ;;  %v946_v10 = vld [vmem:[#allocation7 + $0x240] sm:$0xff] }
 0x2c6   :  { %3040 = vmatprep.subr.bf16.mxu0 %v3545_v39  ;;  %v3065_v12 = vpack.c.bf16 %v947_v11, %v946_v10 }
 0x2c9   :  { %3042 = vmatpush3.bf16.msra.mxu0 %v3041_v13  ;;  %v948_v13 = vld [vmem:[#allocation7 + $0x250] sm:$0xff] }
 0x2ca   :  { %3043 = vmatprep.subr.bf16.mxu0 %v3545_v39  ;;  %v3068_v15 = vpack.c.bf16 %v949_v14, %v948_v13 }
 0x2cd   :  { %3045 = vmatpush3.bf16.msra.mxu0 %v3044_v16  ;;  %v950_v16 = vld [vmem:[#allocation7 + $0x260] sm:$0xff] }
 0x2ce   :  { %3046 = vmatprep.subr.bf16.mxu0 %v3545_v39  ;;  %v3071_v18 = vpack.c.bf16 %v951_v17, %v950_v16 }
 0x2d1   :  { %3048 = vmatpush3.bf16.msra.mxu0 %v3047_v19  ;;  %v952_v19 = vld [vmem:[#allocation7 + $0x270] sm:$0xff] }
 0x2d2   :  { %3049 = vmatprep.subr.bf16.mxu0 %v3545_v39  ;;  %v3074_v21 = vpack.c.bf16 %v953_v20, %v952_v19  ;;  %v1048_v19 = vld [vmem:[#allocation7 + $0x2f0] sm:$0xff]  ;;  %v1049_v20 = vld [vmem:[#allocation7 + $0x2f8] sm:$0xff] }
 0x2d5   :  { %3051 = vmatpush3.bf16.msra.mxu0 %v3050_v22  ;;  %v1034_v22 = vld [vmem:[#allocation7 + $0x280] sm:$0xff] }
 0x2d6   :  { %3076 = vmatprep.subr.bf16.mxu0 %v3545_v39 }
 0x389   :  { %v654_v25 = vpop.f32.mrb[4].mxu0 }
 0x38a   :  { %v658_v26 = vrot.slane %v654_v25, 4  ;;  %v665_v27 = vmul.f32 %v654_v25, %v654_v25  ;;  %v2517_v28 = vpop.f32.mrb[5].mxu0 }
 0x38c   :  { %v659_v29 = vadd.f32 %v658_v26, %v654_v25  ;;  %v666_v30 = vrot.slane %v665_v27, 4 }
 0x38e   :  { %v660_v31 = vrot.slane %v659_v29, 2  ;;  %v667_v32 = vadd.f32 %v666_v30, %v665_v27 }
 0x390   :  { %v661_v33 = vadd.f32 %v660_v31, %v659_v29  ;;  %v668_v34 = vrot.slane %v667_v32, 2 }
 0x392   :  { %v662_v35 = vrot.slane %v661_v33, 1  ;;  %v669_v36 = vadd.f32 %v668_v34, %v667_v32 }
 0x394   :  { %v663_v37 = vadd.f32 %v662_v35, %v661_v33  ;;  %v670_v38 = vrot.slane %v669_v36, 1 }
 0x396   :  { %v664_v40 = vmul.f32 0.125, %v663_v37  ;;  %v671_v41 = vadd.f32 %v670_v38, %v669_v36 }
 0x398   :  { %v672_v42 = vmul.f32 0.125, %v671_v41  ;;  %v673_v43 = vmul.f32 %v664_v40, %v664_v40 }
 0x39a   :  { %v674_v44 = vsub.f32 %v672_v42, %v673_v43 }
 0x39c   :  { %v675_v46 = vmax.f32 %v674_v44, 0.0 }
 0x39e   :  { %v676_v47 = vadd.f32 1e-05, %v675_v46  ;;  %v3780_v46 = vsub.s32 3, %v3722_v55 }
 0x3a0   :  { %3327 = vrsqrt.f32 %v676_v47 }
 0x3aa   :  { %v3328_v49 = vpop.eup %3327 }
 0x3ab   :  { %v678_v50 = vmul.f32 %v3328_v49, %v3724_v56 }
 0x3ad   :  { %v679_v52 = vmul.f32 %v678_v50, %v664_v40  ;;  %v684_v53 = vrot.slane %v678_v50, %v3763_v48 }
 0x3af   :  { %v680_v54 = vsub.f32 %v3730_v60, %v679_v52  ;;  %v685_v58 = vmul.f32 %v684_v53, %v654_v25 }
 0x3b1   :  { %v689_v59 = vrot.slane %v680_v54, %v3763_v48 }
 0x3b3   :  { %v690_v61 = vadd.f32 %v689_v59, %v685_v58 }
 0x3b5   :  { %v691_v62 = vmax.f32 %v690_v61, 0.0 }
 0x3b7   :  { %2551 = vmatmul.mubr.f32.vlgmr.msra.gmra.mrb[4].mxu1 %v691_v62  ;;  %v938_v62 = vld [vmem:[#allocation7 + $0x200] sm:$0xff] }
 0x3b8   :  { %2620 = vmatprep.mubr.msk.f32.mxu1 %vm3546_vm0, %v3547_v45  ;;  %v3053_v0 = vpack.c.bf16 %v939_v63, %v938_v62 }
 0x3ba   :  { %3054 = vmatpush3.bf16.msra.mxu1 %v3053_v0 }
 0x3bb   :  { %3055 = vmatprep.subr.bf16.mxu1 %v3545_v39 }
 0x3be   :  { %3057 = vmatpush3.bf16.msra.mxu1 %v3056_v3 }
 0x3bf   :  { %3058 = vmatprep.subr.bf16.mxu1 %v3545_v39 }
 0x3c2   :  { %3060 = vmatpush3.bf16.msra.mxu1 %v3059_v6 }
 0x3c3   :  { %3061 = vmatprep.subr.bf16.mxu1 %v3545_v39 }
 0x3c6   :  { %3063 = vmatpush3.bf16.msra.mxu1 %v3062_v9  ;;  %v3804_v9 = vsub.s32 4, %v3722_v55 }
 0x3c7   :  { %3064 = vmatprep.subr.bf16.mxu1 %v3545_v39 }
 0x3ca   :  { %3066 = vmatpush3.bf16.msra.mxu1 %v3065_v12 }
 0x3cb   :  { %3067 = vmatprep.subr.bf16.mxu1 %v3545_v39 }
 0x3ce   :  { %3069 = vmatpush3.bf16.msra.mxu1 %v3068_v15 }
 0x3cf   :  { %3070 = vmatprep.subr.bf16.mxu1 %v3545_v39 }
 0x3d2   :  { %3072 = vmatpush3.bf16.msra.mxu1 %v3071_v18 }
 0x3d3   :  { %3073 = vmatprep.subr.bf16.mxu1 %v3545_v39 }
 0x3d6   :  { %3075 = vmatpush3.bf16.msra.mxu1 %v3074_v21  ;;  %v3098_v21 = vpack.c.bf16 %v1049_v20, %v1048_v19 }
 0x3d7   :  { %3100 = vmatprep.subr.bf16.mxu1 %v3545_v39 }
 0x48a   :  { %v776_v23 = vpop.f32.mrb[4].mxu1 }
 0x48b   :  { %v780_v24 = vrot.slane %v776_v23, 4  ;;  %v787_v25 = vmul.f32 %v776_v23, %v776_v23  ;;  %v2552_v26 = vpop.f32.mrb[5].mxu1 }
 0x48c   :  { %v1037_v26 = vld [vmem:[#allocation7 + $0x298] sm:$0xff] }
 0x48d   :  { %v781_v27 = vadd.f32 %v780_v24, %v776_v23  ;;  %v788_v28 = vrot.slane %v787_v25, 4  ;;  %v1036_v24 = vld [vmem:[#allocation7 + $0x290] sm:$0xff] }
 0x48f   :  { %v782_v29 = vrot.slane %v781_v27, 2  ;;  %v789_v30 = vadd.f32 %v788_v28, %v787_v25  ;;  %v1038_v28 = vld [vmem:[#allocation7 + $0x2a0] sm:$0xff] }
 0x491   :  { %v783_v31 = vadd.f32 %v782_v29, %v781_v27  ;;  %v790_v32 = vrot.slane %v789_v30, 2  ;;  %v3080_v27 = vpack.c.bf16 %v1037_v26, %v1036_v24  ;;  %v1039_v29 = vld [vmem:[#allocation7 + $0x2a8] sm:$0xff]  ;;  %v1156_v26 = vld [vmem:[#allocation7 + $0x300] sm:$0xff] }
 0x493   :  { %v784_v33 = vrot.slane %v783_v31, 1  ;;  %v791_v34 = vadd.f32 %v790_v32, %v789_v30  ;;  %v3083_v30 = vpack.c.bf16 %v1039_v29, %v1038_v28  ;;  %v1041_v32 = vld [vmem:[#allocation7 + $0x2b8] sm:$0xff]  ;;  %v1158_v29 = vld [vmem:[#allocation7 + $0x310] sm:$0xff] }
 0x495   :  { %v785_v35 = vadd.f32 %v784_v33, %v783_v31  ;;  %v792_v36 = vrot.slane %v791_v34, 1  ;;  %v1040_v31 = vld [vmem:[#allocation7 + $0x2b0] sm:$0xff] }
 0x496   :  { %v3086_v33 = vpack.c.bf16 %v1041_v32, %v1040_v31  ;;  %v1160_v32 = vld [vmem:[#allocation7 + $0x320] sm:$0xff] }
 0x497   :  { %v786_v37 = vmul.f32 0.125, %v785_v35  ;;  %v793_v38 = vadd.f32 %v792_v36, %v791_v34  ;;  %v1042_v34 = vld [vmem:[#allocation7 + $0x2c0] sm:$0xff]  ;;  %v1043_v35 = vld [vmem:[#allocation7 + $0x2c8] sm:$0xff] }
 0x498   :  { %v3089_v36 = vpack.c.bf16 %v1043_v35, %v1042_v34  ;;  %v1162_v35 = vld [vmem:[#allocation7 + $0x330] sm:$0xff] }
 0x499   :  { %v794_v40 = vmul.f32 0.125, %v793_v38  ;;  %v795_v41 = vmul.f32 %v786_v37, %v786_v37  ;;  %v1045_v38 = vld [vmem:[#allocation7 + $0x2d8] sm:$0xff] }
 0x49b   :  { %v796_v42 = vsub.f32 %v794_v40, %v795_v41  ;;  %v1046_v41 = vld [vmem:[#allocation7 + $0x2e0] sm:$0xff] }
 0x49d   :  { %v797_v43 = vmax.f32 %v796_v42, 0.0  ;;  %v1047_v42 = vld [vmem:[#allocation7 + $0x2e8] sm:$0xff] }
 0x49f   :  { %v798_v44 = vadd.f32 1e-05, %v797_v43  ;;  %v3095_v43 = vpack.c.bf16 %v1047_v42, %v1046_v41  ;;  %v1166_v42 = vld [vmem:[#allocation7 + $0x350] sm:$0xff] }
 0x4a1   :  { %3329 = vrsqrt.f32 %v798_v44 }
 0x4ab   :  { %v3330_v47 = vpop.eup %3329 }
 0x4ac   :  { %v800_v49 = vmul.f32 %v3330_v47, %v3724_v56 }
 0x4ae   :  { %v801_v50 = vmul.f32 %v800_v49, %v786_v37  ;;  %v806_v52 = vrot.slane %v800_v49, %v3780_v46  ;;  %v1044_v37 = vld [vmem:[#allocation7 + $0x2d0] sm:$0xff] }
 0x4af   :  { %v3092_v40 = vpack.c.bf16 %v1045_v38, %v1044_v37  ;;  %v1164_v38 = vld [vmem:[#allocation7 + $0x340] sm:$0xff] }
 0x4b0   :  { %v802_v53 = vsub.f32 %v3730_v60, %v801_v50  ;;  %v807_v54 = vmul.f32 %v806_v52, %v776_v23  ;;  %v1035_v23 = vld [vmem:[#allocation7 + $0x288] sm:$0xff] }
 0x4b1   :  { %v3077_v25 = vpack.c.bf16 %v1035_v23, %v1034_v22  ;;  %v2121_v22 = vld [vmem:[%s3935_s6] ss:$0 sm:$0xff]  ;;  %s3548_s6 = smov [#allocation13]  }
 0x4b2   :  { %v811_v58 = vrot.slane %v802_v53, %v3780_v46  ;;  %s2095_s20 = sshll.u32 %s3548_s6, 4  ;;  %s2096_s20 = int_to_ptr.vmem [resolvable:$true] %s2095_s20 }
 0x4b3   :  { %s3479_s17 = scalar_lea.vmem %s2096_s20, 128  ;;  %p3484_p7 = scmp.lt.s32.totalorder %s2096_s20, %s2096_s20 }
 0x4b4   :  { %v812_v59 = vadd.f32 %v811_v58, %v807_v54  ;;  %p3480_p6 = scmp.ne.s32.totalorder %s2096_s20, %s3479_s17  ;;  %p3485_p8 = scmp.lt.s32.totalorder %s3479_s17, %s3479_s17 }
 0x4b6   :  { %v813_v61 = vmax.f32 %v812_v59, 0.0  ;;  %p3486_p9 = por %p3485_p8, %p3484_p7 }
 0x4b8   :  { %2586 = vmatmul.mubr.f32.vlgmr.msra.gmra.mrb[6].mxu0 %v813_v61  ;;  %p3487_p10 = pnand %p3486_p9, %p3480_p6 }
 0x4b9   :  { %2655 = vmatprep.mubr.msk.f32.mxu0 %vm3546_vm0, %v3547_v45  ;;  %3078 = vmatpush3.bf16.msra.mxu0 %v3077_v25 }
 0x4ba   :  { %3079 = vmatprep.subr.bf16.mxu0 %v3545_v39 }
 0x4bd   :  { %3081 = vmatpush3.bf16.msra.mxu0 %v3080_v27  ;;  %v1157_v27 = vld [vmem:[#allocation7 + $0x308] sm:$0xff] }
 0x4be   :  { %3082 = vmatprep.subr.bf16.mxu0 %v3545_v39  ;;  %v3101_v28 = vpack.c.bf16 %v1157_v27, %v1156_v26  ;;  %v1278_v27 = vld [vmem:[#allocation7 + $0x380] sm:$0xff] }
 0x4c1   :  { %3084 = vmatpush3.bf16.msra.mxu0 %v3083_v30  ;;  %v1159_v30 = vld [vmem:[#allocation7 + $0x318] sm:$0xff] }
 0x4c2   :  { %3085 = vmatprep.subr.bf16.mxu0 %v3545_v39  ;;  %v3104_v31 = vpack.c.bf16 %v1159_v30, %v1158_v29  ;;  %v1280_v30 = vld [vmem:[#allocation7 + $0x390] sm:$0xff] }
 0x4c5   :  { %3087 = vmatpush3.bf16.msra.mxu0 %v3086_v33  ;;  %v1161_v33 = vld [vmem:[#allocation7 + $0x328] sm:$0xff] }
 0x4c6   :  { %3088 = vmatprep.subr.bf16.mxu0 %v3545_v39  ;;  %v3107_v34 = vpack.c.bf16 %v1161_v33, %v1160_v32  ;;  %v1282_v33 = vld [vmem:[#allocation7 + $0x3a0] sm:$0xff] }
 0x4c9   :  { %3090 = vmatpush3.bf16.msra.mxu0 %v3089_v36  ;;  %v1163_v36 = vld [vmem:[#allocation7 + $0x338] sm:$0xff] }
 0x4ca   :  { %3091 = vmatprep.subr.bf16.mxu0 %v3545_v39  ;;  %v3110_v37 = vpack.c.bf16 %v1163_v36, %v1162_v35  ;;  %v1284_v36 = vld [vmem:[#allocation7 + $0x3b0] sm:$0xff] }
 0x4cd   :  { %3093 = vmatpush3.bf16.msra.mxu0 %v3092_v40  ;;  %v1165_v40 = vld [vmem:[#allocation7 + $0x348] sm:$0xff] }
 0x4ce   :  { %3094 = vmatprep.subr.bf16.mxu0 %v3545_v39  ;;  %v3113_v41 = vpack.c.bf16 %v1165_v40, %v1164_v38  ;;  %v1286_v40 = vld [vmem:[#allocation7 + $0x3c0] sm:$0xff] }
 0x4d1   :  { %3096 = vmatpush3.bf16.msra.mxu0 %v3095_v43  ;;  %v1167_v43 = vld [vmem:[#allocation7 + $0x358] sm:$0xff] }
 0x4d2   :  { %3097 = vmatprep.subr.bf16.mxu0 %v3545_v39 }
 0x4d5   :  { %3099 = vmatpush3.bf16.msra.mxu0 %v3098_v21 }
 0x4d6   :  { %3124 = vmatprep.subr.bf16.mxu0 %v3545_v39 }
 0x58b   :  { %v898_v44 = vpop.f32.mrb[6].mxu0 }
 0x58c   :  { %v902_v47 = vrot.slane %v898_v44, 4  ;;  %v909_v49 = vmul.f32 %v898_v44, %v898_v44  ;;  %v2587_v50 = vpop.f32.mrb[7].mxu0 }
 0x58e   :  { %v903_v52 = vadd.f32 %v902_v47, %v898_v44  ;;  %v910_v53 = vrot.slane %v909_v49, 4  ;;  %v1168_v47 = vld [vmem:[#allocation7 + $0x360] sm:$0xff] }
 0x590   :  { %v904_v54 = vrot.slane %v903_v52, 2  ;;  %v911_v58 = vadd.f32 %v910_v53, %v909_v49  ;;  %v1169_v49 = vld [vmem:[#allocation7 + $0x368] sm:$0xff]  ;;  %v1171_v53 = vld [vmem:[#allocation7 + $0x378] sm:$0xff] }
 0x591   :  { %v3119_v50 = vpack.c.bf16 %v1169_v49, %v1168_v47  ;;  %v1290_v49 = vld [vmem:[#allocation7 + $0x3e0] sm:$0xff] }
 0x592   :  { %v905_v59 = vadd.f32 %v904_v54, %v903_v52  ;;  %v912_v61 = vrot.slane %v911_v58, 2  ;;  %v1170_v52 = vld [vmem:[#allocation7 + $0x370] sm:$0xff] }
 0x593   :  { %v3122_v54 = vpack.c.bf16 %v1171_v53, %v1170_v52  ;;  %v1292_v53 = vld [vmem:[#allocation7 + $0x3f0] sm:$0xff] }
 0x594   :  { %v906_v62 = vrot.slane %v905_v59, 1  ;;  %v913_v63 = vadd.f32 %v912_v61, %v911_v58 }
 0x596   :  { %v907_v0 = vadd.f32 %v906_v62, %v905_v59  ;;  %v914_v1 = vrot.slane %v913_v63, 1 }
 0x598   :  { %v908_v2 = vmul.f32 0.125, %v907_v0  ;;  %v915_v3 = vadd.f32 %v914_v1, %v913_v63 }
 0x59a   :  { %v916_v4 = vmul.f32 0.125, %v915_v3  ;;  %v917_v5 = vmul.f32 %v908_v2, %v908_v2 }
 0x59c   :  { %v918_v6 = vsub.f32 %v916_v4, %v917_v5 }
 0x59e   :  { %v919_v7 = vmax.f32 %v918_v6, 0.0 }
 0x5a0   :  { %v920_v8 = vadd.f32 1e-05, %v919_v7 }
 0x5a2   :  { %3331 = vrsqrt.f32 %v920_v8 }
 0x5ac   :  { %v3332_v10 = vpop.eup %3331 }
 0x5ad   :  { %v922_v11 = vmul.f32 %v3332_v10, %v3724_v56 }
 0x5af   :  { %v923_v12 = vmul.f32 %v922_v11, %v908_v2  ;;  %v928_v13 = vrot.slane %v922_v11, %v3804_v9 }
 0x5b1   :  { %v924_v14 = vsub.f32 %v3730_v60, %v923_v12  ;;  %v929_v15 = vmul.f32 %v928_v13, %v898_v44  ;;  %v3116_v44 = vpack.c.bf16 %v1167_v43, %v1166_v42  ;;  %v1288_v43 = vld [vmem:[#allocation7 + $0x3d0] sm:$0xff] }
 0x5b3   :  { %v933_v16 = vrot.slane %v924_v14, %v3804_v9 }
 0x5b5   :  { %v934_v17 = vadd.f32 %v933_v16, %v929_v15 }
 0x5b7   :  { %v935_v18 = vmax.f32 %v934_v17, 0.0  ;;  %v1145_v17 = vsub.s32 5, %v3722_v55 }
 0x5b9   :  { %2621 = vmatmul.mubr.f32.vlgmr.msra.gmra.mrb[6].mxu1 %v935_v18 }
 0x5ba   :  { %2690 = vmatprep.mubr.msk.f32.mxu1 %vm3546_vm0, %v3547_v45  ;;  %3102 = vmatpush3.bf16.msra.mxu1 %v3101_v28  ;;  %v1279_v28 = vld [vmem:[#allocation7 + $0x388] sm:$0xff] }
 0x5bb   :  { %3103 = vmatprep.subr.bf16.mxu1 %v3545_v39  ;;  %v3125_v29 = vpack.c.bf16 %v1279_v28, %v1278_v27  ;;  %v1400_v28 = vld [vmem:[#allocation7 + $0x400] sm:$0xff] }
 0x5be   :  { %3105 = vmatpush3.bf16.msra.mxu1 %v3104_v31  ;;  %v1281_v31 = vld [vmem:[#allocation7 + $0x398] sm:$0xff] }
 0x5bf   :  { %3106 = vmatprep.subr.bf16.mxu1 %v3545_v39  ;;  %v3128_v32 = vpack.c.bf16 %v1281_v31, %v1280_v30  ;;  %v1402_v31 = vld [vmem:[#allocation7 + $0x410] sm:$0xff] }
 0x5c2   :  { %3108 = vmatpush3.bf16.msra.mxu1 %v3107_v34  ;;  %v1283_v34 = vld [vmem:[#allocation7 + $0x3a8] sm:$0xff] }
 0x5c3   :  { %3109 = vmatprep.subr.bf16.mxu1 %v3545_v39  ;;  %v3131_v35 = vpack.c.bf16 %v1283_v34, %v1282_v33  ;;  %v1405_v33 = vld [vmem:[#allocation7 + $0x428] sm:$0xff] }
 0x5c6   :  { %3111 = vmatpush3.bf16.msra.mxu1 %v3110_v37  ;;  %v1285_v37 = vld [vmem:[#allocation7 + $0x3b8] sm:$0xff] }
 0x5c7   :  { %3112 = vmatprep.subr.bf16.mxu1 %v3545_v39  ;;  %v3134_v38 = vpack.c.bf16 %v1285_v37, %v1284_v36  ;;  %v1407_v36 = vld [vmem:[#allocation7 + $0x438] sm:$0xff] }
 0x5ca   :  { %3114 = vmatpush3.bf16.msra.mxu1 %v3113_v41  ;;  %v1287_v41 = vld [vmem:[#allocation7 + $0x3c8] sm:$0xff] }
 0x5cb   :  { %3115 = vmatprep.subr.bf16.mxu1 %v3545_v39  ;;  %v3137_v42 = vpack.c.bf16 %v1287_v41, %v1286_v40  ;;  %v1409_v40 = vld [vmem:[#allocation7 + $0x448] sm:$0xff] }
 0x5ce   :  { %3117 = vmatpush3.bf16.msra.mxu1 %v3116_v44  ;;  %v1289_v44 = vld [vmem:[#allocation7 + $0x3d8] sm:$0xff] }
 0x5cf   :  { %3118 = vmatprep.subr.bf16.mxu1 %v3545_v39  ;;  %v3140_v47 = vpack.c.bf16 %v1289_v44, %v1288_v43  ;;  %v1411_v43 = vld [vmem:[#allocation7 + $0x458] sm:$0xff] }
 0x5d2   :  { %3120 = vmatpush3.bf16.msra.mxu1 %v3119_v50  ;;  %v1291_v50 = vld [vmem:[#allocation7 + $0x3e8] sm:$0xff] }
 0x5d3   :  { %3121 = vmatprep.subr.bf16.mxu1 %v3545_v39  ;;  %v3143_v52 = vpack.c.bf16 %v1291_v50, %v1290_v49  ;;  %v1413_v49 = vld [vmem:[#allocation7 + $0x468] sm:$0xff] }
 0x5d6   :  { %3123 = vmatpush3.bf16.msra.mxu1 %v3122_v54  ;;  %v1293_v54 = vld [vmem:[#allocation7 + $0x3f8] sm:$0xff] }
 0x5d7   :  { %3148 = vmatprep.subr.bf16.mxu1 %v3545_v39 }
 0x68c   :  { %v1027_v23 = vpop.f32.mrb[6].mxu1 }
 0x68d   :  { %v1028_v24 = vadd.f32 %v2121_v22, %v1027_v23  ;;  %v2622_v25 = vpop.f32.mrb[7].mxu1 }
 0x68f   :  { %1031 = vst [vmem:[#allocation13] sm:$0xff] %v1028_v24  ;;  %2656 = vmatmul.mubr.f32.vlgmr.msra.gmra.mrb[8].mxu0 %v1028_v24 }
 0x690   :  { %2725 = vmatprep.mubr.msk.f32.mxu0 %vm3546_vm0, %v3547_v45  ;;  %3126 = vmatpush3.bf16.msra.mxu0 %v3125_v29  ;;  %v1401_v29 = vld [vmem:[#allocation7 + $0x408] sm:$0xff] }
 0x691   :  { %3127 = vmatprep.subr.bf16.mxu0 %v3545_v39  ;;  %v3149_v30 = vpack.c.bf16 %v1401_v29, %v1400_v28  ;;  %v1522_v29 = vld [vmem:[#allocation7 + $0x480] sm:$0xff] }
 0x694   :  { %3129 = vmatpush3.bf16.msra.mxu0 %v3128_v32 }
 0x695   :  { %3130 = vmatprep.subr.bf16.mxu0 %v3545_v39 }
 0x698   :  { %3132 = vmatpush3.bf16.msra.mxu0 %v3131_v35  ;;  %v1406_v35 = vld [vmem:[#allocation7 + $0x430] sm:$0xff] }
 0x699   :  { %3133 = vmatprep.subr.bf16.mxu0 %v3545_v39  ;;  %v3158_v37 = vpack.c.bf16 %v1407_v36, %v1406_v35  ;;  %v1528_v35 = vld [vmem:[#allocation7 + $0x4b0] sm:$0xff]  ;;  %v1529_v36 = vld [vmem:[#allocation7 + $0x4b8] sm:$0xff] }
 0x69c   :  { %3135 = vmatpush3.bf16.msra.mxu0 %v3134_v38  ;;  %v1408_v38 = vld [vmem:[#allocation7 + $0x440] sm:$0xff] }
 0x69d   :  { %3136 = vmatprep.subr.bf16.mxu0 %v3545_v39  ;;  %v3161_v41 = vpack.c.bf16 %v1409_v40, %v1408_v38  ;;  %v1530_v38 = vld [vmem:[#allocation7 + $0x4c0] sm:$0xff]  ;;  %v1531_v40 = vld [vmem:[#allocation7 + $0x4c8] sm:$0xff] }
 0x6a0   :  { %3138 = vmatpush3.bf16.msra.mxu0 %v3137_v42  ;;  %v1410_v42 = vld [vmem:[#allocation7 + $0x450] sm:$0xff] }
 0x6a1   :  { %3139 = vmatprep.subr.bf16.mxu0 %v3545_v39  ;;  %v3164_v44 = vpack.c.bf16 %v1411_v43, %v1410_v42  ;;  %v1532_v42 = vld [vmem:[#allocation7 + $0x4d0] sm:$0xff]  ;;  %v1533_v43 = vld [vmem:[#allocation7 + $0x4d8] sm:$0xff] }
 0x6a4   :  { %3141 = vmatpush3.bf16.msra.mxu0 %v3140_v47  ;;  %v1412_v47 = vld [vmem:[#allocation7 + $0x460] sm:$0xff] }
 0x6a5   :  { %3142 = vmatprep.subr.bf16.mxu0 %v3545_v39  ;;  %v3167_v50 = vpack.c.bf16 %v1413_v49, %v1412_v47  ;;  %v1534_v47 = vld [vmem:[#allocation7 + $0x4e0] sm:$0xff]  ;;  %v1535_v49 = vld [vmem:[#allocation7 + $0x4e8] sm:$0xff] }
 0x6a8   :  { %3144 = vmatpush3.bf16.msra.mxu0 %v3143_v52  ;;  %v1414_v52 = vld [vmem:[#allocation7 + $0x470] sm:$0xff] }
 0x6a9   :  { %3145 = vmatprep.subr.bf16.mxu0 %v3545_v39 }
 0x762   :  { %v1116_v58 = vpop.f32.mrb[8].mxu0 }
 0x763   :  { %v1120_v59 = vrot.slane %v1116_v58, 4  ;;  %v1127_v61 = vmul.f32 %v1116_v58, %v1116_v58  ;;  %v2657_v62 = vpop.f32.mrb[9].mxu0 }
 0x765   :  { %v1121_v63 = vadd.f32 %v1120_v59, %v1116_v58  ;;  %v1128_v0 = vrot.slane %v1127_v61, 4 }
 0x767   :  { %v1122_v1 = vrot.slane %v1121_v63, 2  ;;  %v1129_v2 = vadd.f32 %v1128_v0, %v1127_v61 }
 0x769   :  { %v1123_v3 = vadd.f32 %v1122_v1, %v1121_v63  ;;  %v1130_v4 = vrot.slane %v1129_v2, 2 }
 0x76b   :  { %v1124_v5 = vrot.slane %v1123_v3, 1  ;;  %v1131_v6 = vadd.f32 %v1130_v4, %v1129_v2 }
 0x76d   :  { %v1125_v7 = vadd.f32 %v1124_v5, %v1123_v3  ;;  %v1132_v8 = vrot.slane %v1131_v6, 1 }
 0x76f   :  { %v1126_v10 = vmul.f32 0.125, %v1125_v7  ;;  %v1133_v11 = vadd.f32 %v1132_v8, %v1131_v6 }
 0x771   :  { %v1134_v12 = vmul.f32 0.125, %v1133_v11  ;;  %v1135_v13 = vmul.f32 %v1126_v10, %v1126_v10 }
 0x773   :  { %v1136_v14 = vsub.f32 %v1134_v12, %v1135_v13 }
 0x775   :  { %v1137_v15 = vmax.f32 %v1136_v14, 0.0 }
 0x777   :  { %v1138_v16 = vadd.f32 1e-05, %v1137_v15 }
 0x779   :  { %3333 = vrsqrt.f32 %v1138_v16 }
 0x783   :  { %v3334_v18 = vpop.eup %3333 }
 0x784   :  { %v1140_v19 = vmul.f32 %v3334_v18, %v3724_v56  ;;  %v1267_v18 = vsub.s32 6, %v3722_v55 }
 0x786   :  { %v1141_v20 = vmul.f32 %v1140_v19, %v1126_v10  ;;  %v1146_v21 = vrot.slane %v1140_v19, %v1145_v17 }
 0x788   :  { %v1142_v22 = vsub.f32 %v3730_v60, %v1141_v20  ;;  %v1147_v23 = vmul.f32 %v1146_v21, %v1116_v58  ;;  %v3146_v58 = vpack.c.bf16 %v1293_v54, %v1292_v53  ;;  %v1415_v53 = vld [vmem:[#allocation7 + $0x478] sm:$0xff] }
 0x789   :  { %v3170_v54 = vpack.c.bf16 %v1415_v53, %v1414_v52  ;;  %v1536_v52 = vld [vmem:[#allocation7 + $0x4f0] sm:$0xff]  ;;  %v1537_v53 = vld [vmem:[#allocation7 + $0x4f8] sm:$0xff] }
 0x78a   :  { %v1151_v24 = vrot.slane %v1142_v22, %v1145_v17  ;;  %3147 = vmatpush3.bf16.msra.mxu0 %v3146_v58 }
 0x78b   :  { %3172 = vmatprep.subr.bf16.mxu0 %v3545_v39 }
 0x78c   :  { %v1152_v25 = vadd.f32 %v1151_v24, %v1147_v23 }
 0x78e   :  { %v1153_v26 = vmax.f32 %v1152_v25, 0.0 }
 0x790   :  { %2691 = vmatmul.mubr.f32.vlgmr.msra.gmra.mrb[8].mxu1 %v1153_v26 }
 0x791   :  { %2760 = vmatprep.mubr.msk.f32.mxu1 %vm3546_vm0, %v3547_v45  ;;  %3150 = vmatpush3.bf16.msra.mxu1 %v3149_v30  ;;  %v1523_v30 = vld [vmem:[#allocation7 + $0x488] sm:$0xff] }
 0x792   :  { %3151 = vmatprep.subr.bf16.mxu1 %v3545_v39 }
 0x863   :  { %v1238_v59 = vpop.f32.mrb[8].mxu1 }
 0x864   :  { %v1242_v61 = vrot.slane %v1238_v59, 4  ;;  %v1249_v62 = vmul.f32 %v1238_v59, %v1238_v59  ;;  %v2692_v63 = vpop.f32.mrb[9].mxu1 }
 0x866   :  { %v1243_v0 = vadd.f32 %v1242_v61, %v1238_v59  ;;  %v1250_v1 = vrot.slane %v1249_v62, 4 }
 0x868   :  { %v1244_v2 = vrot.slane %v1243_v0, 2  ;;  %v1251_v3 = vadd.f32 %v1250_v1, %v1249_v62 }
 0x86a   :  { %v1245_v4 = vadd.f32 %v1244_v2, %v1243_v0  ;;  %v1252_v5 = vrot.slane %v1251_v3, 2 }
 0x86c   :  { %v1246_v6 = vrot.slane %v1245_v4, 1  ;;  %v1253_v7 = vadd.f32 %v1252_v5, %v1251_v3 }
 0x86e   :  { %v1247_v8 = vadd.f32 %v1246_v6, %v1245_v4  ;;  %v1254_v10 = vrot.slane %v1253_v7, 1 }
 0x870   :  { %v1248_v11 = vmul.f32 0.125, %v1247_v8  ;;  %v1255_v12 = vadd.f32 %v1254_v10, %v1253_v7 }
 0x872   :  { %v1256_v13 = vmul.f32 0.125, %v1255_v12  ;;  %v1257_v14 = vmul.f32 %v1248_v11, %v1248_v11 }
 0x874   :  { %v1258_v15 = vsub.f32 %v1256_v13, %v1257_v14 }
 0x876   :  { %v1259_v16 = vmax.f32 %v1258_v15, 0.0 }
 0x878   :  { %v1260_v17 = vadd.f32 1e-05, %v1259_v16 }
 0x87a   :  { %3335 = vrsqrt.f32 %v1260_v17  ;;  %v1389_v17 = vsub.s32 7, %v3722_v55  ;;  %v1524_v55 = vld [vmem:[#allocation7 + $0x490] sm:$0xff] }
 0x884   :  { %v3336_v19 = vpop.eup %3335 }
 0x885   :  { %v1262_v20 = vmul.f32 %v3336_v19, %v3724_v56  ;;  %v1403_v56 = vld [vmem:[#allocation7 + $0x418] sm:$0xff]  ;;  %v3345_v19 = vld [vmem:[#allocation10] sm:$0xff] }
 0x886   :  { %v3152_v32 = vpack.c.bf16 %v1403_v56, %v1402_v31  ;;  %v3173_v31 = vpack.c.bf16 %v1523_v30, %v1522_v29  ;;  %v1525_v56 = vld [vmem:[#allocation7 + $0x498] sm:$0xff]  ;;  %v1645_v29 = vld [vmem:[#allocation7 + $0x508] sm:$0xff] }
 0x887   :  { %v1263_v21 = vmul.f32 %v1262_v20, %v1248_v11  ;;  %v1268_v22 = vrot.slane %v1262_v20, %v1267_v18 }
 0x888   :  { %3153 = vmatpush3.bf16.msra.mxu1 %v3152_v32  ;;  %v3176_v32 = vpack.c.bf16 %v1525_v56, %v1524_v55  ;;  %v1647_v55 = vld [vmem:[#allocation7 + $0x518] sm:$0xff] }
 0x889   :  { %v1264_v23 = vsub.f32 %v3730_v60, %v1263_v21  ;;  %v1269_v24 = vmul.f32 %v1268_v22, %v1238_v59  ;;  %3154 = vmatprep.subr.bf16.mxu1 %v3545_v39  ;;  %v1404_v60 = vld [vmem:[#allocation7 + $0x420] sm:$0xff] }
 0x88a   :  { %v3155_v34 = vpack.c.bf16 %v1405_v33, %v1404_v60  ;;  %v1526_v60 = vld [vmem:[#allocation7 + $0x4a0] sm:$0xff]  ;;  %v1527_v33 = vld [vmem:[#allocation7 + $0x4a8] sm:$0xff] }
 0x88b   :  { %v1273_v25 = vrot.slane %v1264_v23, %v1267_v18  ;;  %v3346_v23 = vld [vmem:[#allocation11] sm:$0xff] }
 0x88c   :  { %3156 = vmatpush3.bf16.msra.mxu1 %v3155_v34  ;;  %v3179_v34 = vpack.c.bf16 %v1527_v33, %v1526_v60  ;;  %v1649_v60 = vld [vmem:[#allocation7 + $0x528] sm:$0xff] }
 0x88d   :  { %v1274_v26 = vadd.f32 %v1273_v25, %v1269_v24  ;;  %3157 = vmatprep.subr.bf16.mxu1 %v3545_v39 }
 0x88f   :  { %v1275_v27 = vmax.f32 %v1274_v26, 0.0 }
 0x890   :  { %3159 = vmatpush3.bf16.msra.mxu1 %v3158_v37  ;;  %v3182_v37 = vpack.c.bf16 %v1529_v36, %v1528_v35  ;;  %v1651_v35 = vld [vmem:[#allocation7 + $0x538] sm:$0xff] }
 0x891   :  { %2726 = vmatmul.mubr.f32.vlgmr.msra.gmra.mrb[10].mxu0 %v1275_v27  ;;  %3160 = vmatprep.subr.bf16.mxu1 %v3545_v39 }
 0x892   :  { %2795 = vmatprep.mubr.msk.f32.mxu0 %vm3546_vm0, %v3547_v45  ;;  %3174 = vmatpush3.bf16.msra.mxu0 %v3173_v31  ;;  %v1646_v31 = vld [vmem:[#allocation7 + $0x510] sm:$0xff] }
 0x893   :  { %3175 = vmatprep.subr.bf16.mxu0 %v3545_v39  ;;  %v3200_v56 = vpack.c.bf16 %v1647_v55, %v1646_v31  ;;  %v1770_v31 = vld [vmem:[#allocation8 + $0x28] sm:$0xff]  ;;  %v1768_v55 = vld [vmem:[#allocation8 + $0x18] sm:$0xff] }
 0x894   :  { %3162 = vmatpush3.bf16.msra.mxu1 %v3161_v41  ;;  %v3185_v41 = vpack.c.bf16 %v1531_v40, %v1530_v38  ;;  %v1653_v38 = vld [vmem:[#allocation7 + $0x548] sm:$0xff] }
 0x895   :  { %3163 = vmatprep.subr.bf16.mxu1 %v3545_v39 }
 0x896   :  { %3177 = vmatpush3.bf16.msra.mxu0 %v3176_v32  ;;  %v1648_v32 = vld [vmem:[#allocation7 + $0x520] sm:$0xff] }
 0x897   :  { %3178 = vmatprep.subr.bf16.mxu0 %v3545_v39  ;;  %v3203_v33 = vpack.c.bf16 %v1649_v60, %v1648_v32  ;;  %v1773_v32 = vld [vmem:[#allocation8 + $0x40] sm:$0xff]  ;;  %v1767_v60 = vld [vmem:[#allocation8 + $0x10] sm:$0xff] }
 0x898   :  { %3165 = vmatpush3.bf16.msra.mxu1 %v3164_v44  ;;  %v3188_v44 = vpack.c.bf16 %v1533_v43, %v1532_v42  ;;  %v1655_v42 = vld [vmem:[#allocation7 + $0x558] sm:$0xff] }
 0x899   :  { %3166 = vmatprep.subr.bf16.mxu1 %v3545_v39 }
 0x89a   :  { %3180 = vmatpush3.bf16.msra.mxu0 %v3179_v34  ;;  %v1650_v34 = vld [vmem:[#allocation7 + $0x530] sm:$0xff] }
 0x89b   :  { %3181 = vmatprep.subr.bf16.mxu0 %v3545_v39  ;;  %v3206_v36 = vpack.c.bf16 %v1651_v35, %v1650_v34  ;;  %v3252_v34 = vpack.c.bf16 %v1773_v32, %v1768_v55  ;;  %v1816_v55 = vld [vmem:[#allocation8 + $0x198] sm:$0xff] }
 0x89c   :  { %3168 = vmatpush3.bf16.msra.mxu1 %v3167_v50  ;;  %v3191_v50 = vpack.c.bf16 %v1535_v49, %v1534_v47  ;;  %v1657_v47 = vld [vmem:[#allocation7 + $0x568] sm:$0xff] }
 0x89d   :  { %3169 = vmatprep.subr.bf16.mxu1 %v3545_v39 }
 0x89e   :  { %3183 = vmatpush3.bf16.msra.mxu0 %v3182_v37  ;;  %v1652_v37 = vld [vmem:[#allocation7 + $0x540] sm:$0xff] }
 0x89f   :  { %3184 = vmatprep.subr.bf16.mxu0 %v3545_v39  ;;  %v3209_v40 = vpack.c.bf16 %v1653_v38, %v1652_v37  ;;  %v1781_v37 = vld [vmem:[#allocation8 + $0x80] sm:$0xff] }
 0x8a0   :  { %3171 = vmatpush3.bf16.msra.mxu1 %v3170_v54  ;;  %v3194_v54 = vpack.c.bf16 %v1537_v53, %v1536_v52  ;;  %v1659_v52 = vld [vmem:[#allocation7 + $0x578] sm:$0xff] }
 0x8a1   :  { %3196 = vmatprep.subr.bf16.mxu1 %v3545_v39 }
 0x8a2   :  { %3186 = vmatpush3.bf16.msra.mxu0 %v3185_v41  ;;  %v1654_v41 = vld [vmem:[#allocation7 + $0x550] sm:$0xff] }
 0x8a3   :  { %3187 = vmatprep.subr.bf16.mxu0 %v3545_v39  ;;  %v3212_v43 = vpack.c.bf16 %v1655_v42, %v1654_v41  ;;  %v1780_v41 = vld [vmem:[#allocation8 + $0x78] sm:$0xff]  ;;  %v1778_v42 = vld [vmem:[#allocation8 + $0x68] sm:$0xff] }
 0x8a6   :  { %3189 = vmatpush3.bf16.msra.mxu0 %v3188_v44  ;;  %v1656_v44 = vld [vmem:[#allocation7 + $0x560] sm:$0xff] }
 0x8a7   :  { %3190 = vmatprep.subr.bf16.mxu0 %v3545_v39  ;;  %v3215_v49 = vpack.c.bf16 %v1657_v47, %v1656_v44  ;;  %v1783_v44 = vld [vmem:[#allocation8 + $0x90] sm:$0xff]  ;;  %v1777_v47 = vld [vmem:[#allocation8 + $0x60] sm:$0xff] }
 0x8aa   :  { %3192 = vmatpush3.bf16.msra.mxu0 %v3191_v50  ;;  %v1658_v50 = vld [vmem:[#allocation7 + $0x570] sm:$0xff] }
 0x8ab   :  { %3193 = vmatprep.subr.bf16.mxu0 %v3545_v39  ;;  %v3218_v53 = vpack.c.bf16 %v1659_v52, %v1658_v50  ;;  %v3256_v50 = vpack.c.bf16 %v1783_v44, %v1778_v42  ;;  %v1826_v42 = vld [vmem:[#allocation8 + $0x1e8] sm:$0xff] }
 0x8ae   :  { %3195 = vmatpush3.bf16.msra.mxu0 %v3194_v54 }
 0x964   :  { %v1360_v58 = vpop.f32.mrb[10].mxu0 }
 0x965   :  { %v1364_v59 = vrot.slane %v1360_v58, 4  ;;  %v1371_v61 = vmul.f32 %v1360_v58, %v1360_v58  ;;  %v2727_v62 = vpop.f32.mrb[11].mxu0 }
 0x967   :  { %v1365_v63 = vadd.f32 %v1364_v59, %v1360_v58  ;;  %v1372_v0 = vrot.slane %v1371_v61, 4 }
 0x969   :  { %v1366_v1 = vrot.slane %v1365_v63, 2  ;;  %v1373_v2 = vadd.f32 %v1372_v0, %v1371_v61 }
 0x96b   :  { %v1367_v3 = vadd.f32 %v1366_v1, %v1365_v63  ;;  %v1374_v4 = vrot.slane %v1373_v2, 2 }
 0x96d   :  { %v1368_v5 = vrot.slane %v1367_v3, 1  ;;  %v1375_v6 = vadd.f32 %v1374_v4, %v1373_v2 }
 0x96f   :  { %v1369_v7 = vadd.f32 %v1368_v5, %v1367_v3  ;;  %v1376_v8 = vrot.slane %v1375_v6, 1 }
 0x971   :  { %v1370_v10 = vmul.f32 0.125, %v1369_v7  ;;  %v1377_v11 = vadd.f32 %v1376_v8, %v1375_v6 }
 0x973   :  { %v1378_v12 = vmul.f32 0.125, %v1377_v11  ;;  %v1379_v13 = vmul.f32 %v1370_v10, %v1370_v10 }
 0x975   :  { %v1380_v14 = vsub.f32 %v1378_v12, %v1379_v13 }
 0x977   :  { %v1381_v15 = vmax.f32 %v1380_v14, 0.0 }
 0x979   :  { %v1382_v16 = vadd.f32 1e-05, %v1381_v15 }
 0x97b   :  { %3337 = vrsqrt.f32 %v1382_v16 }
 0x985   :  { %v3338_v18 = vpop.eup %3337 }
 0x986   :  { %v1384_v20 = vmul.f32 %v3345_v19, %v3338_v18 }
 0x988   :  { %v1385_v21 = vmul.f32 %v1384_v20, %v1370_v10  ;;  %v1390_v22 = vrot.slane %v1384_v20, %v1389_v17  ;;  %v3865_v20 = vld [vmem:[#allocation11 + $0x8] sm:$0xff] }
 0x98a   :  { %v1386_v24 = vsub.f32 %v3346_v23, %v1385_v21  ;;  %v1391_v25 = vmul.f32 %v1390_v22, %v1360_v58 }
 0x98c   :  { %v1395_v26 = vrot.slane %v1386_v24, %v1389_v17  ;;  %v3862_v17 = vld [vmem:[#allocation10 + $0x8] sm:$0xff] }
 0x98e   :  { %v1396_v27 = vadd.f32 %v1395_v26, %v1391_v25 }
 0x990   :  { %v1397_v28 = vmax.f32 %v1396_v27, 0.0 }
 0x992   :  { %2761 = vmatmul.mubr.f32.vlgmr.msra.gmra.mrb[10].mxu1 %v1397_v28  ;;  %v1644_v28 = vld [vmem:[#allocation7 + $0x500] sm:$0xff] }
 0x993   :  { %2830 = vmatprep.mubr.msk.f32.mxu1 %vm3546_vm0, %v3547_v45  ;;  %v3197_v30 = vpack.c.bf16 %v1645_v29, %v1644_v28  ;;  %v1771_v28 = vld [vmem:[#allocation8 + $0x30] sm:$0xff] }
 0x995   :  { %3198 = vmatpush3.bf16.msra.mxu1 %v3197_v30  ;;  %v1765_v30 = vld [vmem:[#allocation8] sm:$0xff] }
 0x996   :  { %3199 = vmatprep.subr.bf16.mxu1 %v3545_v39 }
 0x999   :  { %3201 = vmatpush3.bf16.msra.mxu1 %v3200_v56  ;;  %v3222_v56 = vpack.c.bf16 %v1770_v31, %v1765_v30 }
 0x99a   :  { %3202 = vmatprep.subr.bf16.mxu1 %v3545_v39 }
 0x99d   :  { %3204 = vmatpush3.bf16.msra.mxu1 %v3203_v33  ;;  %v1772_v33 = vld [vmem:[#allocation8 + $0x38] sm:$0xff] }
 0x99e   :  { %3205 = vmatprep.subr.bf16.mxu1 %v3545_v39  ;;  %v3254_v35 = vpack.c.bf16 %v1772_v33, %v1767_v60  ;;  %v1815_v60 = vld [vmem:[#allocation8 + $0x190] sm:$0xff]  ;;  %v1820_v33 = vld [vmem:[#allocation8 + $0x1b8] sm:$0xff] }
 0x9a1   :  { %3207 = vmatpush3.bf16.msra.mxu1 %v3206_v36  ;;  %v1776_v36 = vld [vmem:[#allocation8 + $0x58] sm:$0xff] }
 0x9a2   :  { %3208 = vmatprep.subr.bf16.mxu1 %v3545_v39  ;;  %v3224_v38 = vpack.c.bf16 %v1781_v37, %v1776_v36  ;;  %v1823_v36 = vld [vmem:[#allocation8 + $0x1d0] sm:$0xff]  ;;  %v1817_v37 = vld [vmem:[#allocation8 + $0x1a0] sm:$0xff] }
 0x9a5   :  { %3210 = vmatpush3.bf16.msra.mxu1 %v3209_v40  ;;  %v1775_v40 = vld [vmem:[#allocation8 + $0x50] sm:$0xff] }
 0x9a6   :  { %3211 = vmatprep.subr.bf16.mxu1 %v3545_v39 }
 0x9a9   :  { %3213 = vmatpush3.bf16.msra.mxu1 %v3212_v43  ;;  %v3226_v43 = vpack.c.bf16 %v1780_v41, %v1775_v40 }
 0x9aa   :  { %3214 = vmatprep.subr.bf16.mxu1 %v3545_v39 }
 0x9ad   :  { %3216 = vmatpush3.bf16.msra.mxu1 %v3215_v49  ;;  %v1782_v49 = vld [vmem:[#allocation8 + $0x88] sm:$0xff] }
 0x9ae   :  { %3217 = vmatprep.subr.bf16.mxu1 %v3545_v39  ;;  %v3258_v52 = vpack.c.bf16 %v1782_v49, %v1777_v47  ;;  %v1825_v47 = vld [vmem:[#allocation8 + $0x1e0] sm:$0xff]  ;;  %v1830_v49 = vld [vmem:[#allocation8 + $0x208] sm:$0xff] }
 0x9b1   :  { %3219 = vmatpush3.bf16.msra.mxu1 %v3218_v53  ;;  %v1786_v53 = vld [vmem:[#allocation8 + $0xa8] sm:$0xff] }
 0x9b2   :  { %3253 = vmatprep.subr.bf16.mxu1 %v3252_v34  ;;  %v1818_v34 = vld [vmem:[#allocation8 + $0x1a8] sm:$0xff] }
 0x9b3   :  { %v3272_v40 = vpack.c.bf16 %v1823_v36, %v1818_v34 }
 0xa65   :  { %v1482_v58 = vpop.f32.mrb[10].mxu1 }
 0xa66   :  { %v1486_v59 = vrot.slane %v1482_v58, 4  ;;  %v1493_v61 = vmul.f32 %v1482_v58, %v1482_v58  ;;  %v2762_v62 = vpop.f32.mrb[11].mxu1 }
 0xa68   :  { %v1487_v63 = vadd.f32 %v1486_v59, %v1482_v58  ;;  %v1494_v0 = vrot.slane %v1493_v61, 4 }
 0xa6a   :  { %v1488_v1 = vrot.slane %v1487_v63, 2  ;;  %v1495_v2 = vadd.f32 %v1494_v0, %v1493_v61 }
 0xa6c   :  { %v1489_v3 = vadd.f32 %v1488_v1, %v1487_v63  ;;  %v1496_v4 = vrot.slane %v1495_v2, 2 }
 0xa6e   :  { %v1490_v5 = vrot.slane %v1489_v3, 1  ;;  %v1497_v6 = vadd.f32 %v1496_v4, %v1495_v2 }
 0xa70   :  { %v1491_v7 = vadd.f32 %v1490_v5, %v1489_v3  ;;  %v1498_v8 = vrot.slane %v1497_v6, 1 }
 0xa72   :  { %v1492_v10 = vmul.f32 0.125, %v1491_v7  ;;  %v1499_v11 = vadd.f32 %v1498_v8, %v1497_v6 }
 0xa74   :  { %v1500_v12 = vmul.f32 0.125, %v1499_v11  ;;  %v1501_v13 = vmul.f32 %v1492_v10, %v1492_v10 }
 0xa76   :  { %v1502_v14 = vsub.f32 %v1500_v12, %v1501_v13 }
 0xa78   :  { %v1503_v15 = vmax.f32 %v1502_v14, 0.0 }
 0xa7a   :  { %v1504_v16 = vadd.f32 1e-05, %v1503_v15 }
 0xa7c   :  { %3339 = vrsqrt.f32 %v1504_v16 }
 0xa86   :  { %v3340_v18 = vpop.eup %3339 }
 0xa87   :  { %v1506_v19 = vmul.f32 %v3340_v18, %v3862_v17 }
 0xa89   :  { %v1507_v21 = vmul.f32 %v1506_v19, %v1492_v10  ;;  %v1512_v22 = vrot.slane %v1506_v19, %v3727_v57 }
 0xa8b   :  { %v1508_v23 = vsub.f32 %v3865_v20, %v1507_v21  ;;  %v1513_v24 = vmul.f32 %v1512_v22, %v1482_v58 }
 0xa8d   :  { %v1517_v25 = vrot.slane %v1508_v23, %v3727_v57 }
 0xa8f   :  { %v1518_v26 = vadd.f32 %v1517_v25, %v1513_v24 }
 0xa91   :  { %v1519_v27 = vmax.f32 %v1518_v26, 0.0 }
 0xa93   :  { %2796 = vmatmul.mubr.f32.vlgmr.msra.gmra.mrb[12].mxu0 %v1519_v27  ;;  %v1766_v27 = vld [vmem:[#allocation8 + $0x8] sm:$0xff] }
 0xa94   :  { %1936 = vmatprep.mubr.f32.mxu0 %v3547_v45  ;;  %v3220_v29 = vpack.c.bf16 %v1771_v28, %v1766_v27  ;;  %v1813_v27 = vld [vmem:[#allocation8 + $0x180] sm:$0xff]  ;;  %v1807_v28 = vld [vmem:[#allocation8 + $0x150] sm:$0xff] }
 0xa96   :  { %3221 = vmatprep.subr.bf16.mxu0 %v3220_v29  ;;  %v1812_v29 = vld [vmem:[#allocation8 + $0x178] sm:$0xff] }
 0xa97   :  { %3223 = vmatpush1.bf16.msra.mxu0 %v3222_v56  ;;  %v3270_v31 = vpack.c.bf16 %v1812_v29, %v1807_v28  ;;  %v1821_v56 = vld [vmem:[#allocation8 + $0x1c0] sm:$0xff] }
 0xa98   :  { %3225 = vmatprep.subr.bf16.mxu0 %v3224_v38  ;;  %v3240_v32 = vpack.c.bf16 %v1821_v56, %v1816_v55  ;;  %v1822_v38 = vld [vmem:[#allocation8 + $0x1c8] sm:$0xff] }
 0xa99   :  { %v3274_v41 = vpack.c.bf16 %v1822_v38, %v1817_v37  ;;  %v1769_v38 = vld [vmem:[#allocation8 + $0x20] sm:$0xff] }
 0xa9b   :  { %3227 = vmatpush1.bf16.msra.mxu0 %v3226_v43  ;;  %v1831_v43 = vld [vmem:[#allocation8 + $0x210] sm:$0xff] }
 0xa9c   :  { %v3244_v44 = vpack.c.bf16 %v1831_v43, %v1826_v42 }
 0xb66   :  { %v1604_v54 = vpop.f32.mrb[12].mxu0 }
 0xb67   :  { %v1608_v58 = vrot.slane %v1604_v54, 4  ;;  %v1615_v59 = vmul.f32 %v1604_v54, %v1604_v54  ;;  %v2797_v61 = vpop.f32.mrb[13].mxu0 }
 0xb68   :  { %v1790_v61 = vld [vmem:[#allocation8 + $0xc8] sm:$0xff] }
 0xb69   :  { %v1609_v62 = vadd.f32 %v1608_v58, %v1604_v54  ;;  %v1616_v63 = vrot.slane %v1615_v59, 4 }
 0xb6b   :  { %v1610_v0 = vrot.slane %v1609_v62, 2  ;;  %v1617_v1 = vadd.f32 %v1616_v63, %v1615_v59  ;;  %v1785_v59 = vld [vmem:[#allocation8 + $0xa0] sm:$0xff] }
 0xb6c   :  { %v3230_v63 = vpack.c.bf16 %v1790_v61, %v1785_v59 }
 0xb6d   :  { %v1611_v2 = vadd.f32 %v1610_v0, %v1609_v62  ;;  %v1618_v3 = vrot.slane %v1617_v1, 2  ;;  %v1788_v62 = vld [vmem:[#allocation8 + $0xb8] sm:$0xff]  ;;  %v1793_v0 = vld [vmem:[#allocation8 + $0xe0] sm:$0xff] }
 0xb6f   :  { %v1612_v4 = vrot.slane %v1611_v2, 1  ;;  %v1619_v5 = vadd.f32 %v1618_v3, %v1617_v1  ;;  %v1787_v1 = vld [vmem:[#allocation8 + $0xb0] sm:$0xff]  ;;  %v3260_v3 = vpack.c.bf16 %v1793_v0, %v1788_v62  ;;  %v1836_v62 = vld [vmem:[#allocation8 + $0x238] sm:$0xff] }
 0xb71   :  { %v1613_v6 = vadd.f32 %v1612_v4, %v1611_v2  ;;  %v1620_v7 = vrot.slane %v1619_v5, 1  ;;  %v1792_v2 = vld [vmem:[#allocation8 + $0xd8] sm:$0xff] }
 0xb72   :  { %v3262_v4 = vpack.c.bf16 %v1792_v2, %v1787_v1  ;;  %v1835_v1 = vld [vmem:[#allocation8 + $0x230] sm:$0xff]  ;;  %v1840_v2 = vld [vmem:[#allocation8 + $0x258] sm:$0xff] }
 0xb73   :  { %v1614_v8 = vmul.f32 0.125, %v1613_v6  ;;  %v1621_v10 = vadd.f32 %v1620_v7, %v1619_v5  ;;  %v1796_v5 = vld [vmem:[#allocation8 + $0xf8] sm:$0xff]  ;;  %v1801_v6 = vld [vmem:[#allocation8 + $0x120] sm:$0xff] }
 0xb74   :  { %v3232_v7 = vpack.c.bf16 %v1801_v6, %v1796_v5  ;;  %v1843_v5 = vld [vmem:[#allocation8 + $0x270] sm:$0xff]  ;;  %v1837_v6 = vld [vmem:[#allocation8 + $0x240] sm:$0xff] }
 0xb75   :  { %v1622_v11 = vmul.f32 0.125, %v1621_v10  ;;  %v1623_v12 = vmul.f32 %v1614_v8, %v1614_v8  ;;  %v1800_v10 = vld [vmem:[#allocation8 + $0x118] sm:$0xff] }
 0xb77   :  { %v1624_v13 = vsub.f32 %v1622_v11, %v1623_v12  ;;  %v1798_v11 = vld [vmem:[#allocation8 + $0x108] sm:$0xff] }
 0xb79   :  { %v1625_v14 = vmax.f32 %v1624_v13, 0.0  ;;  %v1803_v13 = vld [vmem:[#allocation8 + $0x130] sm:$0xff] }
 0xb7b   :  { %v1626_v15 = vadd.f32 1e-05, %v1625_v14  ;;  %v1797_v14 = vld [vmem:[#allocation8 + $0x100] sm:$0xff] }
 0xb7d   :  { %3341 = vrsqrt.f32 %v1626_v15  ;;  %v1802_v15 = vld [vmem:[#allocation8 + $0x128] sm:$0xff] }
 0xb87   :  { %v3342_v16 = vpop.eup %3341 }
 0xb88   :  { %v1628_v18 = vmul.f32 %v3342_v16, %v3862_v17  ;;  %v3264_v16 = vpack.c.bf16 %v1803_v13, %v1798_v11 }
 0xb8a   :  { %v1629_v19 = vmul.f32 %v1628_v18, %v1614_v8  ;;  %v1634_v21 = vrot.slane %v1628_v18, %v3746_v51  ;;  %v1795_v8 = vld [vmem:[#allocation8 + $0xf0] sm:$0xff]  ;;  %v3266_v18 = vpack.c.bf16 %v1802_v15, %v1797_v14 }
 0xb8b   :  { %v3234_v12 = vpack.c.bf16 %v1800_v10, %v1795_v8 }
 0xb8c   :  { %v1630_v22 = vsub.f32 %v3865_v20, %v1629_v19  ;;  %v1635_v23 = vmul.f32 %v1634_v21, %v1604_v54  ;;  %v1791_v54 = vld [vmem:[#allocation8 + $0xd0] sm:$0xff]  ;;  %v1806_v19 = vld [vmem:[#allocation8 + $0x148] sm:$0xff] }
 0xb8d   :  { %v3228_v58 = vpack.c.bf16 %v1791_v54, %v1786_v53  ;;  %v1811_v21 = vld [vmem:[#allocation8 + $0x170] sm:$0xff]  ;;  %v1833_v53 = vld [vmem:[#allocation8 + $0x220] sm:$0xff] }
 0xb8e   :  { %v1639_v24 = vrot.slane %v1630_v22, %v3746_v51  ;;  %v3236_v22 = vpack.c.bf16 %v1811_v21, %v1806_v19  ;;  %v1827_v54 = vld [vmem:[#allocation8 + $0x1f0] sm:$0xff] }
 0xb8f   :  { %3229 = vmatprep.subr.bf16.mxu0 %v3228_v58  ;;  %v1832_v58 = vld [vmem:[#allocation8 + $0x218] sm:$0xff] }
 0xb90   :  { %v1640_v25 = vadd.f32 %v1639_v24, %v1635_v23  ;;  %3231 = vmatpush1.bf16.msra.mxu0 %v3230_v63  ;;  %v1805_v23 = vld [vmem:[#allocation8 + $0x140] sm:$0xff]  ;;  %v1810_v24 = vld [vmem:[#allocation8 + $0x168] sm:$0xff]  ;;  %v3278_v61 = vpack.c.bf16 %v1832_v58, %v1827_v54 }
 0xb91   :  { %3233 = vmatprep.subr.bf16.mxu0 %v3232_v7  ;;  %v1841_v63 = vld [vmem:[#allocation8 + $0x260] sm:$0xff]  ;;  %v1842_v7 = vld [vmem:[#allocation8 + $0x268] sm:$0xff] }
 0xb92   :  { %v1641_v26 = vmax.f32 %v1640_v25, 0.0  ;;  %v1808_v25 = vld [vmem:[#allocation8 + $0x158] sm:$0xff]  ;;  %v3248_v0 = vpack.c.bf16 %v1841_v63, %v1836_v62  ;;  %v3282_v10 = vpack.c.bf16 %v1842_v7, %v1837_v6  ;;  %v1809_v58 = vld [vmem:[#allocation8 + $0x160] sm:$0xff] }
 0xb93   :  { %v3268_v30 = vpack.c.bf16 %v1813_v27, %v1808_v25  ;;  %v1824_v62 = vld [vmem:[#allocation8 + $0x1d8] sm:$0xff] }
 0xb94   :  { %2831 = vmatmul.mubr.f32.vlgmr.msra.gmra.mrb[12].mxu1 %v1641_v26  ;;  %3235 = vmatpush1.bf16.msra.mxu0 %v3234_v12  ;;  %v3238_v26 = vpack.c.bf16 %v1810_v24, %v1805_v23 }
 0xb95   :  { %2007 = vmatprep.mubr.f32.mxu1 %v3547_v45  ;;  %3255 = vmatpush1.bf16.msra.mxu1 %v3254_v35  ;;  %v3242_v35 = vpack.c.bf16 %v1820_v33, %v1815_v60 }
 0xb96   :  { %3257 = vmatprep.subr.bf16.mxu1 %v3256_v50  ;;  %3237 = vmatprep.subr.bf16.mxu0 %v3236_v22  ;;  %v1828_v50 = vld [vmem:[#allocation8 + $0x1f8] sm:$0xff] }
 0xb97   :  { %v3276_v59 = vpack.c.bf16 %v1833_v53, %v1828_v50  ;;  %v1804_v53 = vld [vmem:[#allocation8 + $0x138] sm:$0xff] }
 0xb98   :  { %3239 = vmatpush1.bf16.msra.mxu0 %v3238_v26 }
 0xb99   :  { %3259 = vmatpush1.bf16.msra.mxu1 %v3258_v52  ;;  %3241 = vmatprep.subr.bf16.mxu0 %v3240_v32  ;;  %v3246_v52 = vpack.c.bf16 %v1830_v49, %v1825_v47  ;;  %v1784_v47 = vld [vmem:[#allocation8 + $0x98] sm:$0xff] }
 0xb9a   :  { %3261 = vmatprep.subr.bf16.mxu1 %v3260_v3  ;;  %v1838_v3 = vld [vmem:[#allocation8 + $0x248] sm:$0xff] }
 0xb9b   :  { %v3280_v8 = vpack.c.bf16 %v1843_v5, %v1838_v3  ;;  %v1839_v3 = vld [vmem:[#allocation8 + $0x250] sm:$0xff] }
 0xb9c   :  { %3243 = vmatpush1.bf16.msra.mxu0 %v3242_v35 }
 0xb9d   :  { %3263 = vmatpush1.bf16.msra.mxu1 %v3262_v4  ;;  %3245 = vmatprep.subr.bf16.mxu0 %v3244_v44  ;;  %v3250_v4 = vpack.c.bf16 %v1840_v2, %v1835_v1  ;;  %v1779_v44 = vld [vmem:[#allocation8 + $0x70] sm:$0xff]  ;;  %v1834_v1 = vld [vmem:[#allocation8 + $0x228] sm:$0xff] }
 0xb9e   :  { %3265 = vmatprep.subr.bf16.mxu1 %v3264_v16  ;;  %v3288_v49 = vpack.c.bf16 %v1784_v47, %v1779_v44 }
 0xba0   :  { %3247 = vmatpush1.bf16.msra.mxu0 %v3246_v52  ;;  %v1799_v52 = vld [vmem:[#allocation8 + $0x110] sm:$0xff] }
 0xba1   :  { %3267 = vmatpush1.bf16.msra.mxu1 %v3266_v18  ;;  %3249 = vmatprep.subr.bf16.mxu0 %v3248_v0  ;;  %v3294_v54 = vpack.c.bf16 %v1804_v53, %v1799_v52  ;;  %v1829_v0 = vld [vmem:[#allocation8 + $0x200] sm:$0xff] }
 0xba2   :  { %3269 = vmatprep.subr.bf16.mxu1 %v3268_v30  ;;  %v3303_v2 = vpack.c.bf16 %v1834_v1, %v1829_v0 }
 0xba4   :  { %3251 = vmatpush1.bf16.msra.mxu0 %v3250_v4  ;;  %v1844_v4 = vld [vmem:[#allocation8 + $0x278] sm:$0xff] }
 0xba5   :  { %3271 = vmatpush1.bf16.msra.mxu1 %v3270_v31  ;;  %3284 = vmatprep.subr.bf16.mxu0 %v3545_v39  ;;  %v3306_v5 = vpack.c.bf16 %v1844_v4, %v1839_v3 }
 0xba6   :  { %3273 = vmatprep.subr.bf16.mxu1 %v3272_v40  ;;  %v1774_v40 = vld [vmem:[#allocation8 + $0x48] sm:$0xff] }
 0xba7   :  { %v3285_v42 = vpack.c.bf16 %v1774_v40, %v1769_v38 }
 0xba9   :  { %3275 = vmatpush1.bf16.msra.mxu1 %v3274_v41 }
 0xbaa   :  { %3277 = vmatprep.subr.bf16.mxu1 %v3276_v59  ;;  %v1814_v59 = vld [vmem:[#allocation8 + $0x188] sm:$0xff] }
 0xbad   :  { %3279 = vmatpush1.bf16.msra.mxu1 %v3278_v61  ;;  %v3297_v61 = vpack.c.bf16 %v1814_v59, %v1809_v58 }
 0xbae   :  { %3281 = vmatprep.subr.bf16.mxu1 %v3280_v8 }
 0xbb1   :  { %3283 = vmatpush1.bf16.msra.mxu1 %v3282_v10 }
 0xc67   :  { %v1726_v11 = vpop.f32.mrb[12].mxu1 }
 0xc68   :  { %v1730_v12 = vrot.slane %v1726_v11, 4  ;;  %v1737_v13 = vmul.f32 %v1726_v11, %v1726_v11  ;;  %v2832_v14 = vpop.f32.mrb[13].mxu1 }
 0xc6a   :  { %v1731_v15 = vadd.f32 %v1730_v12, %v1726_v11  ;;  %v1738_v16 = vrot.slane %v1737_v13, 4 }
 0xc6c   :  { %v1732_v18 = vrot.slane %v1731_v15, 2  ;;  %v1739_v19 = vadd.f32 %v1738_v16, %v1737_v13 }
 0xc6e   :  { %v1733_v21 = vadd.f32 %v1732_v18, %v1731_v15  ;;  %v1740_v22 = vrot.slane %v1739_v19, 2 }
 0xc70   :  { %v1734_v23 = vrot.slane %v1733_v21, 1  ;;  %v1741_v24 = vadd.f32 %v1740_v22, %v1739_v19 }
 0xc72   :  { %v1735_v25 = vadd.f32 %v1734_v23, %v1733_v21  ;;  %v1742_v26 = vrot.slane %v1741_v24, 1 }
 0xc74   :  { %v1736_v27 = vmul.f32 0.125, %v1735_v25  ;;  %v1743_v28 = vadd.f32 %v1742_v26, %v1741_v24 }
 0xc76   :  { %v1744_v29 = vmul.f32 0.125, %v1743_v28  ;;  %v1745_v30 = vmul.f32 %v1736_v27, %v1736_v27 }
 0xc78   :  { %v1746_v31 = vsub.f32 %v1744_v29, %v1745_v30 }
 0xc7a   :  { %v1747_v55 = vmax.f32 %v1746_v31, 0.0 }
 0xc7c   :  { %v1748_v56 = vadd.f32 1e-05, %v1747_v55 }
 0xc7e   :  { %3343 = vrsqrt.f32 %v1748_v56 }
 0xc88   :  { %v3344_v32 = vpop.eup %3343 }
 0xc89   :  { %v1750_v60 = vmul.f32 %v3344_v32, %v3862_v17  ;;  %v1789_v17 = vld [vmem:[#allocation8 + $0xc0] sm:$0xff] }
 0xc8b   :  { %v1751_v33 = vmul.f32 %v1750_v60, %v1736_v27  ;;  %v1756_v34 = vrot.slane %v1750_v60, %v3763_v48 }
 0xc8d   :  { %v1752_v35 = vsub.f32 %v3865_v20, %v1751_v33  ;;  %v1757_v36 = vmul.f32 %v1756_v34, %v1726_v11  ;;  %v1794_v20 = vld [vmem:[#allocation8 + $0xe8] sm:$0xff] }
 0xc8e   :  { %v3291_v50 = vpack.c.bf16 %v1794_v20, %v1789_v17 }
 0xc8f   :  { %v1761_v37 = vrot.slane %v1752_v35, %v3763_v48 }
 0xc91   :  { %v1762_v41 = vadd.f32 %v1761_v37, %v1757_v36 }
 0xc93   :  { %v1763_v43 = vmax.f32 %v1762_v41, 0.0 }
 0xc95   :  { %1937 = vmatmul.mubr.f32.vlgmr.msra.gmra.mrb[14].mxu0 %v1763_v43  ;;  %2008 = vmatmul.mubr.f32.vlgmr.msra.gmra.mrb[14].mxu1 %v1763_v43 }
 0xc96   :  { %3286 = vmatpush3.bf16.msra.mxu0 %v3285_v42  ;;  %2865 = vmatprep.mubr.msk.f32.mxu0 %vm3546_vm0, %v3547_v45  ;;  %v1819_v45 = vld [vmem:[#allocation8 + $0x1b0] sm:$0xff] }
 0xc97   :  { %3287 = vmatprep.subr.bf16.mxu0 %v3545_v39  ;;  %v3300_v63 = vpack.c.bf16 %v1824_v62, %v1819_v45 }
 0xc9a   :  { %3289 = vmatpush3.bf16.msra.mxu0 %v3288_v49 }
 0xc9b   :  { %3290 = vmatprep.subr.bf16.mxu0 %v3545_v39 }
 0xc9e   :  { %3292 = vmatpush3.bf16.msra.mxu0 %v3291_v50 }
 0xc9f   :  { %3293 = vmatprep.subr.bf16.mxu0 %v3545_v39 }
 0xca2   :  { %3295 = vmatpush3.bf16.msra.mxu0 %v3294_v54 }
 0xca3   :  { %3296 = vmatprep.subr.bf16.mxu0 %v3545_v39 }
 0xca6   :  { %3298 = vmatpush3.bf16.msra.mxu0 %v3297_v61 }
 0xca7   :  { %3299 = vmatprep.subr.bf16.mxu0 %v3545_v39 }
 0xcaa   :  { %3301 = vmatpush3.bf16.msra.mxu0 %v3300_v63 }
 0xcab   :  { %3302 = vmatprep.subr.bf16.mxu0 %v3545_v39 }
 0xcae   :  { %3304 = vmatpush3.bf16.msra.mxu0 %v3303_v2 }
 0xcaf   :  { %3305 = vmatprep.subr.bf16.mxu0 %v3545_v39 }
 0xcb2   :  { %3307 = vmatpush3.bf16.msra.mxu0 %v3306_v5 }
 0xcb5   :  { %2866 = vmatmul.mubr.f32.vlgmr.msra.gmra.mrb[16].mxu0 %v1763_v43 }
 0xcb6   :  { %3490 = shalt.err (!%p3487_p10)
}
 0xcb7   :  { %s3491_s23 = scalar_lea.hbm %s3937_s8, 128 }
 0xcb8   :  { %p3492_p11 = scmp.ne.s32.totalorder %s3937_s8, %s3491_s23  ;;  %p3495_p12 = scmp.lt.u32.totalorder %s3491_s23, %s3937_s8 }
 0xcba   :  { %p3497_p13 = pnand %p3495_p12, %p3492_p11 }
 0xcbc   :  { %3500 = shalt.err (!%p3497_p13)
}
 0xcbd   :  { %2098 = dma.vmem_to_hbm [thread:$0]  %s2096_s20, 128, %s3937_s8, [#allocation4]   ;;  %v1845_v39 = vld [vmem:[%s3936_s7] sm:$0x1f] }
 0xcbe   :  { %v1850_v6 = vrot.slane %v1845_v39, %v3727_v57  ;;  %v1858_v7 = vrot.slane %v1845_v39, %v3763_v48  ;;  %v1854_v8 = vrot.slane %v1845_v39, %v3746_v51  ;;  %v1862_v10 = vrot.slane %v1845_v39, %v3780_v46  ;;  %s3549_s7 = smov [#allocation14]  }
 0xcbf   :  { %v1866_v57 = vrot.slane %v1845_v39, %v3804_v9  ;;  %s2105_s8 = sshll.u32 %s3549_s7, 4  ;;  %s2106_s8 = int_to_ptr.vmem [resolvable:$true] %s2105_s8 }
 0xcc0   :  { %s3501_s18 = scalar_lea.vmem %s2106_s8, 640  ;;  %p3506_p1 = scmp.lt.s32.totalorder %s2106_s8, %s2106_s8 }
 0xcc1   :  { %p3502_p0 = scmp.ne.s32.totalorder %s2106_s8, %s3501_s18  ;;  %p3507_p2 = scmp.lt.s32.totalorder %s3501_s18, %s3501_s18 }
 0xcc3   :  { %p3508_p3 = por %p3507_p2, %p3506_p1 }
 0xcc5   :  { %p3509_p4 = pnand %p3508_p3, %p3502_p0 }
 0xd68   :  { %v1938_v11 = vpop.f32.mrb[14].mxu0  ;;  %v2009_v12 = vpop.f32.mrb[14].mxu1 }
 0xd69   :  { %v1939_v13 = vadd.f32 %v1938_v11, %v1850_v6  ;;  %v2010_v14 = vadd.f32 %v2009_v12, %v1858_v7  ;;  %v1940_v15 = vpop.f32.mrb[15].mxu0  ;;  %v2011_v16 = vpop.f32.mrb[15].mxu1 }
 0xd6a   :  { %v1941_v18 = vadd.f32 %v1940_v15, %v1854_v8  ;;  %v2012_v19 = vadd.f32 %v2011_v16, %v1862_v10 }
 0xd6b   :  { %2084 = vst [vmem:[#allocation14] sm:$0xff] %v1939_v13  ;;  %2086 = vst [vmem:[#allocation14 + $0x10] sm:$0xff] %v2010_v14 }
 0xd6c   :  { %2085 = vst [vmem:[#allocation14 + $0x8] sm:$0xff] %v1941_v18  ;;  %2087 = vst [vmem:[#allocation14 + $0x18] sm:$0xff] %v2012_v19 }
 0xd88   :  { %v2080_v48 = vpop.f32.mrb[16].mxu0 }
 0xd89   :  { %v2081_v51 = vadd.f32 %v2080_v48, %v1866_v57  ;;  %v2867_v21 = vpop.f32.mrb[17].mxu0 }
 0xd8b   :  { %2088 = vst [vmem:[#allocation14 + $0x20] sm:$0xff] %v2081_v51 }
 0xd8c   :  { %3512 = shalt.err (!%p3509_p4)
}
 0xd8d   :  { %s3513_s12 = scalar_lea.hbm %s3938_s9, 640 }
 0xd8e   :  { %p3514_p5 = scmp.ne.s32.totalorder %s3938_s9, %s3513_s12  ;;  %p3517_p6 = scmp.lt.u32.totalorder %s3513_s12, %s3938_s9 }
 0xd90   :  { %p3519_p7 = pnand %p3517_p6, %p3514_p5 }
 0xd92   :  { %3522 = shalt.err (!%p3519_p7)
}
 0xd93   :  { %2108 = dma.vmem_to_hbm [thread:$0]  %s2106_s8, 640, %s3938_s9, [#allocation15]  }
 0xd94   :  { %3531 = dma.done.wait [#allocation4], 128  }
 0xd95   :  { %3532 = vsyncadd [#allocation4], 4294967168 }
 0xd96   :  { %3533 = dma.done.wait [#allocation15], 640  }
 0xd97   :  { %3534 = vsyncadd [#allocation15], 4294966656 }
 0xd98   :  { %2115 = vsyncpa [#allocation3], 1 }
 0xd99   :  { %2116 = vsyncpa [#allocation6], 1 }
 0xd9a   :  { %2117 = vsyncpa [#allocation9], 1 }
 0xd9b   :  { %2118 = vsyncpa [#allocation12], 1 }
 0xd9c   :  { %2119 = vsyncpa [#allocation4], 1 }
 0xd9d   :  { %2120 = vsyncpa [#allocation15], 1 }

</bundles_post_ra>
